<compile_context>
chip_gen: v6e
topology: v6e:2x2x1
jax: 0.10.0
libtpu: 0.0.40
codegen_flags: <defaults>
</compile_context>

<pallas_src>
import functools
import math

import jax
import jax.numpy as jnp
from jax.experimental import pallas as pl
from jax.experimental.pallas import tpu as pltpu


# ----------------------------------------------------------------------------
# Small deterministic config (mirrors the fields the module reads)
# ----------------------------------------------------------------------------
class GenConfig:
    vocab_size = 128
    emb_dim = 64
    hidden_size = 64
    num_attention_heads = 2
    intermediate_size = 128
    num_hidden_layers = 2
    max_position_embeddings = 32
    type_vocab_size = 2
    pad_token_id = 0
    layer_norm_eps = 1e-12
    hidden_act = "gelu"
    hidden_dropout_prob = 0.0           # dropout is identity at inference
    attention_probs_dropout_prob = 0.0


_SQRT_2 = math.sqrt(2.0)


# ----------------------------------------------------------------------------
# In-kernel math helpers
# ----------------------------------------------------------------------------
def _erf_f32(x):
    """float32 erf via the rational approximation XLA/Eigen use (max err ~1e-7).

    # TODO(synk): torch.erf has no native Pallas/Mosaic lowering; we reproduce
    # XLA's own f32 erf polynomial in-kernel instead (exact-GELU semantics kept).
    """
    x = jnp.clip(x, -4.0, 4.0)
    x2 = x * x
    alpha = (-2.72614225801306e-10, 2.77068142495902e-08, -2.10102402082508e-06,
             -5.69250639462346e-05, -7.34990630326855e-04, -2.95459980854025e-03,
             -1.60960333262415e-02)
    beta = (-1.45660718464996e-05, -2.13374055278905e-04, -1.68282697438203e-03,
            -7.37332916720468e-03, -1.42647390514189e-02)
    p = jnp.full_like(x2, alpha[0])
    for a in alpha[1:]:
        p = p * x2 + a
    q = jnp.full_like(x2, beta[0])
    for b in beta[1:]:
        q = q * x2 + b
    return x * p / q


def _gelu(x):
    # exact (erf-based) gelu, same formula as the reference `gelu`
    return x * 0.5 * (1.0 + _erf_f32(x / _SQRT_2))


def _act(x, act):
    if act == "gelu":
        return _gelu(x)
    if act == "relu":
        return jnp.maximum(x, 0.0)
    if act == "swish":
        return x * jax.nn.sigmoid(x)
    return x


def _ln(x, g, b, eps):
    mu = jnp.mean(x, axis=-1, keepdims=True)
    xc = x - mu
    var = jnp.mean(xc * xc, axis=-1, keepdims=True)
    return xc * jax.lax.rsqrt(var + eps) * g + b


# ----------------------------------------------------------------------------
# The fused Generator kernel (one grid step == one batch element)
# ----------------------------------------------------------------------------
def _generator_kernel(emb_ref, mask_ref,
                      emb_ln_g_ref, emb_ln_b_ref,
                      qkv_w_ref, qkv_b_ref,
                      ao_w_ref, ao_b_ref, a_ln_g_ref, a_ln_b_ref,
                      inter_w_ref, inter_b_ref,
                      out_w_ref, out_b_ref, o_ln_g_ref, o_ln_b_ref,
                      cls_w_ref, cls_b_ref, cls_ln_g_ref, cls_ln_b_ref,
                      dec_w_ref, dec_b_ref,
                      logits_ref,
                      *, num_layers, num_heads, head_dim, eps, scale, act):
    f32 = jnp.float32
    bf16 = jnp.bfloat16
    hs = num_heads * head_dim                       # hidden_size

    mask = mask_ref[0]                              # (1, S) additive attention mask
    # embeddings LayerNorm (no residual, no zero buffer)
    x = _ln(emb_ref[0], emb_ln_g_ref[...], emb_ln_b_ref[...], eps)   # (S, D) f32

    for l in range(num_layers):
        x_in = x

        # ---- fused Q/K/V projection: (S, D) @ (D, 3*hs), bf16 MXU inputs, f32 acc ----
        qkv = jnp.dot(x.astype(bf16), qkv_w_ref[l],
                      preferred_element_type=f32) + qkv_b_ref[l]      # (S, 3*hs)
        q = qkv[:, 0 * hs:1 * hs]
        k = qkv[:, 1 * hs:2 * hs]
        v = qkv[:, 2 * hs:3 * hs]

        # ---- per-head attention; output projection applied per-head and summed,
        #      so head contexts never need concatenation / transposes ----
        attn = jnp.zeros_like(x_in)
        for h in range(num_heads):
            sl = slice(h * head_dim, (h + 1) * head_dim)
            qh = q[:, sl].astype(bf16)
            kh = k[:, sl].astype(bf16)
            vh = v[:, sl].astype(bf16)
            scores = jax.lax.dot_general(
                qh, kh, (((1,), (1,)), ((), ())),
                preferred_element_type=f32) * scale                   # (S, S)
            scores = scores + mask
            scores = scores - jnp.max(scores, axis=-1, keepdims=True)
            p = jnp.exp(scores)
            denom = jnp.sum(p, axis=-1, keepdims=True)
            p = p * pl.reciprocal(denom, approx=True)                 # EUP, off VALU path
            ctx_h = jnp.dot(p.astype(bf16), vh,
                            preferred_element_type=f32)               # (S, head_dim)
            attn = attn + jnp.dot(ctx_h.astype(bf16),
                                  ao_w_ref[l][sl, :],
                                  preferred_element_type=f32)         # (S, D)
        attn = attn + ao_b_ref[l]

        # ---- Add & Norm (residual stays in vregs) ----
        x = _ln(attn + x_in, a_ln_g_ref[l], a_ln_b_ref[l], eps)

        # ---- Feed-forward: dense+GELU and down-projection fused in the same body ----
        inter = jnp.dot(x.astype(bf16), inter_w_ref[l],
                        preferred_element_type=f32) + inter_b_ref[l]  # (S, I)
        inter = _act(inter, act)
        out = jnp.dot(inter.astype(bf16), out_w_ref[l],
                      preferred_element_type=f32) + out_b_ref[l]      # (S, D)
        x = _ln(out + x, o_ln_g_ref[l], o_ln_b_ref[l], eps)

    # ---- MLM head: dense + act + LN, then decoder to vocab (lane-dense output) ----
    h = jnp.dot(x.astype(bf16), cls_w_ref[...],
                preferred_element_type=f32) + cls_b_ref[...]
    h = _act(h, act)
    h = _ln(h, cls_ln_g_ref[...], cls_ln_b_ref[...], eps)
    logits_ref[0] = jnp.dot(h.astype(bf16), dec_w_ref[...],
                            preferred_element_type=f32) + dec_b_ref[...]


# ----------------------------------------------------------------------------
# Deterministic parameter init (shapes follow the nn.Module __init__)
# ----------------------------------------------------------------------------
def init_params(cfg, key):
    keys = iter(jax.random.split(key, 64))
    D = cfg.emb_dim
    Hs = cfg.hidden_size
    I = cfg.intermediate_size
    V = cfg.vocab_size
    L = cfg.num_hidden_layers
    bf16 = jnp.bfloat16

    def w(din, dout):
        return jax.random.normal(next(keys), (din, dout), jnp.float32) * 0.02

    p = {}
    word = jax.random.normal(next(keys), (V, D), jnp.float32) * 0.02
    p["word_emb"] = word.at[cfg.pad_token_id].set(0.0)          # padding_idx row zeroed
    p["pos_emb"] = jax.random.normal(next(keys), (cfg.max_position_embeddings, D),
                                     jnp.float32) * 0.02
    p["tok_emb"] = jax.random.normal(next(keys), (cfg.type_vocab_size, D),
                                     jnp.float32) * 0.02
    p["emb_ln_g"] = jnp.ones((1, D), jnp.float32)
    p["emb_ln_b"] = jnp.zeros((1, D), jnp.float32)

    qkv_w, qkv_b = [], []
    ao_w, ao_b, a_ln_g, a_ln_b = [], [], [], []
    inter_w, inter_b = [], []
    out_w, out_b, o_ln_g, o_ln_b = [], [], [], []
    for _ in range(L):
        qw, kw, vw = w(D, Hs), w(D, Hs), w(D, Hs)
        qkv_w.append(jnp.concatenate([qw, kw, vw], axis=1))     # fused QKV weight
        qkv_b.append(jnp.zeros((1, 3 * Hs), jnp.float32))
        ao_w.append(w(Hs, D))
        ao_b.append(jnp.zeros((1, D), jnp.float32))
        a_ln_g.append(jnp.ones((1, D), jnp.float32))
        a_ln_b.append(jnp.zeros((1, D), jnp.float32))
        inter_w.append(w(D, I))
        inter_b.append(jnp.zeros((1, I), jnp.float32))
        out_w.append(w(I, D))
        out_b.append(jnp.zeros((1, D), jnp.float32))
        o_ln_g.append(jnp.ones((1, D), jnp.float32))
        o_ln_b.append(jnp.zeros((1, D), jnp.float32))

    # matmul weights stored bf16 (halves DMA, feeds MXU at its native input precision);
    # biases / LN params stay f32.
    p["qkv_w"] = jnp.stack(qkv_w).astype(bf16)      # (L, D, 3*Hs)
    p["qkv_b"] = jnp.stack(qkv_b)                   # (L, 1, 3*Hs)
    p["ao_w"] = jnp.stack(ao_w).astype(bf16)        # (L, Hs, D)
    p["ao_b"] = jnp.stack(ao_b)
    p["a_ln_g"] = jnp.stack(a_ln_g)
    p["a_ln_b"] = jnp.stack(a_ln_b)
    p["inter_w"] = jnp.stack(inter_w).astype(bf16)  # (L, D, I)
    p["inter_b"] = jnp.stack(inter_b)
    p["out_w"] = jnp.stack(out_w).astype(bf16)      # (L, I, D)
    p["out_b"] = jnp.stack(out_b)
    p["o_ln_g"] = jnp.stack(o_ln_g)
    p["o_ln_b"] = jnp.stack(o_ln_b)

    p["cls_w"] = w(D, D).astype(bf16)
    p["cls_b"] = jnp.zeros((1, D), jnp.float32)
    p["cls_ln_g"] = jnp.ones((1, D), jnp.float32)
    p["cls_ln_b"] = jnp.zeros((1, D), jnp.float32)
    p["dec_w"] = w(D, V).astype(bf16)
    p["dec_b"] = jnp.zeros((1, V), jnp.float32)     # decoder bias starts at zeros
    return p


# ----------------------------------------------------------------------------
# Generator forward: embedding gathers in JAX (glue), everything else one kernel
# ----------------------------------------------------------------------------
def generator_forward(params, cfg, input_ids, token_type_ids=None, attention_mask=None):
    B, S = input_ids.shape
    D = cfg.emb_dim
    H = cfg.num_attention_heads
    Dh = cfg.hidden_size // H
    V = cfg.vocab_size
    L = cfg.num_hidden_layers

    if attention_mask is None:
        attention_mask = jnp.ones_like(input_ids)
    if token_type_ids is None:
        token_type_ids = jnp.zeros_like(input_ids)

    # compact additive mask (B, 1, S); broadcast over heads/query positions in-kernel
    ext = ((1.0 - attention_mask.astype(jnp.float32)) * -10000.0).reshape(B, 1, S)

    # TODO(synk): embedding-table gathers stay in XLA (tiny tables; an in-kernel DMA
    # gather buys nothing at this size). Dropout is identity at inference.
    pos_ids = jnp.arange(S, dtype=jnp.int32)
    emb = (jnp.take(params["word_emb"], input_ids, axis=0)
           + jnp.take(params["pos_emb"], pos_ids, axis=0)[None, :, :]
           + jnp.take(params["tok_emb"], token_type_ids, axis=0))     # (B, S, D) f32

    weights = (
        params["emb_ln_g"], params["emb_ln_b"],
        params["qkv_w"], params["qkv_b"],
        params["ao_w"], params["ao_b"], params["a_ln_g"], params["a_ln_b"],
        params["inter_w"], params["inter_b"],
        params["out_w"], params["out_b"], params["o_ln_g"], params["o_ln_b"],
        params["cls_w"], params["cls_b"], params["cls_ln_g"], params["cls_ln_b"],
        params["dec_w"], params["dec_b"],
    )

    def full_spec(arr):
        nd = arr.ndim
        shape = arr.shape
        return pl.BlockSpec(shape, lambda b, _nd=nd: (0,) * _nd)   # fetched once

    kernel = functools.partial(
        _generator_kernel, num_layers=L, num_heads=H, head_dim=Dh,
        eps=cfg.layer_norm_eps, scale=1.0 / math.sqrt(Dh), act=cfg.hidden_act)

    logits = pl.pallas_call(
        kernel,
        out_shape=jax.ShapeDtypeStruct((B, S, V), jnp.float32),
        grid=(B,),
        in_specs=[
            pl.BlockSpec((1, S, D), lambda b: (b, 0, 0)),   # embeddings
            pl.BlockSpec((1, 1, S), lambda b: (b, 0, 0)),   # additive mask
        ] + [full_spec(a) for a in weights],
        out_specs=pl.BlockSpec((1, S, V), lambda b: (b, 0, 0)),
        compiler_params=pltpu.CompilerParams(
            dimension_semantics=("parallel",)),             # batch axis -> megacore
    )(emb, ext, *weights)
    return logits


if __name__ == "__main__":
    cfg = GenConfig()
    key = jax.random.PRNGKey(0)
    pkey, dkey = jax.random.split(key)
    params = init_params(cfg, pkey)

    B, S = 2, 16
    input_ids = jax.random.randint(dkey, (B, S), 0, cfg.vocab_size, dtype=jnp.int32)
    token_type_ids = jnp.zeros((B, S), dtype=jnp.int32)
    attention_mask = jnp.ones((B, S), dtype=jnp.int32)

    fwd = jax.jit(functools.partial(generator_forward, params, cfg))
    logits = fwd(input_ids, token_type_ids, attention_mask)
    jax.block_until_ready(logits)

    assert logits.shape == (B, S, cfg.vocab_size), logits.shape
    assert bool(jnp.all(jnp.isfinite(logits)))
    print("KERNEL_OK")
</pallas_src>

<mosaic_0001>
module attributes {stable_mosaic.version = 11 : i64} {
  func.func @_generator_kernel(%arg0: i32, %arg1: memref<1x16x64xf32, #tpu.memory_space<vmem>>, %arg2: memref<1x1x16xf32, #tpu.memory_space<vmem>>, %arg3: memref<1x64xf32, #tpu.memory_space<vmem>>, %arg4: memref<1x64xf32, #tpu.memory_space<vmem>>, %arg5: memref<2x64x192xbf16, #tpu.memory_space<vmem>>, %arg6: memref<2x1x192xf32, #tpu.memory_space<vmem>>, %arg7: memref<2x64x64xbf16, #tpu.memory_space<vmem>>, %arg8: memref<2x1x64xf32, #tpu.memory_space<vmem>>, %arg9: memref<2x1x64xf32, #tpu.memory_space<vmem>>, %arg10: memref<2x1x64xf32, #tpu.memory_space<vmem>>, %arg11: memref<2x64x128xbf16, #tpu.memory_space<vmem>>, %arg12: memref<2x1x128xf32, #tpu.memory_space<vmem>>, %arg13: memref<2x128x64xbf16, #tpu.memory_space<vmem>>, %arg14: memref<2x1x64xf32, #tpu.memory_space<vmem>>, %arg15: memref<2x1x64xf32, #tpu.memory_space<vmem>>, %arg16: memref<2x1x64xf32, #tpu.memory_space<vmem>>, %arg17: memref<64x64xbf16, #tpu.memory_space<vmem>>, %arg18: memref<1x64xf32, #tpu.memory_space<vmem>>, %arg19: memref<1x64xf32, #tpu.memory_space<vmem>>, %arg20: memref<1x64xf32, #tpu.memory_space<vmem>>, %arg21: memref<64x128xbf16, #tpu.memory_space<vmem>>, %arg22: memref<1x128xf32, #tpu.memory_space<vmem>>, %arg23: memref<1x16x128xf32, #tpu.memory_space<vmem>>) attributes {dimension_semantics = [#tpu.dimension_semantics<parallel>], iteration_bounds = array<i64: 2>, scalar_prefetch = 0 : i64, scratch_operands = 0 : i64, tpu.core_type = #tpu.core_type<tc>, window_params = [{transform_indices = @transform_0, window_bounds = array<i64: 1, 16, 64>}, {transform_indices = @transform_1, window_bounds = array<i64: 1, 1, 16>}, {pipeline_mode = #tpu.pipeline_mode<synchronous>, transform_indices = @transform_2, window_bounds = array<i64: 1, 64>}, {pipeline_mode = #tpu.pipeline_mode<synchronous>, transform_indices = @transform_3, window_bounds = array<i64: 1, 64>}, {pipeline_mode = #tpu.pipeline_mode<synchronous>, transform_indices = @transform_4, window_bounds = array<i64: 2, 64, 192>}, {pipeline_mode = #tpu.pipeline_mode<synchronous>, transform_indices = @transform_5, window_bounds = array<i64: 2, 1, 192>}, {pipeline_mode = #tpu.pipeline_mode<synchronous>, transform_indices = @transform_6, window_bounds = array<i64: 2, 64, 64>}, {pipeline_mode = #tpu.pipeline_mode<synchronous>, transform_indices = @transform_7, window_bounds = array<i64: 2, 1, 64>}, {pipeline_mode = #tpu.pipeline_mode<synchronous>, transform_indices = @transform_8, window_bounds = array<i64: 2, 1, 64>}, {pipeline_mode = #tpu.pipeline_mode<synchronous>, transform_indices = @transform_9, window_bounds = array<i64: 2, 1, 64>}, {pipeline_mode = #tpu.pipeline_mode<synchronous>, transform_indices = @transform_10, window_bounds = array<i64: 2, 64, 128>}, {pipeline_mode = #tpu.pipeline_mode<synchronous>, transform_indices = @transform_11, window_bounds = array<i64: 2, 1, 128>}, {pipeline_mode = #tpu.pipeline_mode<synchronous>, transform_indices = @transform_12, window_bounds = array<i64: 2, 128, 64>}, {pipeline_mode = #tpu.pipeline_mode<synchronous>, transform_indices = @transform_13, window_bounds = array<i64: 2, 1, 64>}, {pipeline_mode = #tpu.pipeline_mode<synchronous>, transform_indices = @transform_14, window_bounds = array<i64: 2, 1, 64>}, {pipeline_mode = #tpu.pipeline_mode<synchronous>, transform_indices = @transform_15, window_bounds = array<i64: 2, 1, 64>}, {pipeline_mode = #tpu.pipeline_mode<synchronous>, transform_indices = @transform_16, window_bounds = array<i64: 64, 64>}, {pipeline_mode = #tpu.pipeline_mode<synchronous>, transform_indices = @transform_17, window_bounds = array<i64: 1, 64>}, {pipeline_mode = #tpu.pipeline_mode<synchronous>, transform_indices = @transform_18, window_bounds = array<i64: 1, 64>}, {pipeline_mode = #tpu.pipeline_mode<synchronous>, transform_indices = @transform_19, window_bounds = array<i64: 1, 64>}, {pipeline_mode = #tpu.pipeline_mode<synchronous>, transform_indices = @transform_20, window_bounds = array<i64: 64, 128>}, {pipeline_mode = #tpu.pipeline_mode<synchronous>, transform_indices = @transform_21, window_bounds = array<i64: 1, 128>}, {transform_indices = @transform_22, window_bounds = array<i64: 1, 16, 128>}]} {
    %c0 = arith.constant 0 : index
    %c0_0 = arith.constant 0 : index
    %c0_1 = arith.constant 0 : index
    %0 = vector.load %arg2[%c0, %c0_0, %c0_1] : memref<1x1x16xf32, #tpu.memory_space<vmem>>, vector<1x1x16xf32>
    %1 = vector.shape_cast %0 : vector<1x1x16xf32> to vector<1x16xf32>
    %c0_2 = arith.constant 0 : index
    %c0_3 = arith.constant 0 : index
    %c0_4 = arith.constant 0 : index
    %2 = vector.load %arg1[%c0_2, %c0_3, %c0_4] : memref<1x16x64xf32, #tpu.memory_space<vmem>>, vector<1x16x64xf32>
    %3 = vector.shape_cast %2 : vector<1x16x64xf32> to vector<16x64xf32>
    %c0_5 = arith.constant 0 : index
    %c0_6 = arith.constant 0 : index
    %4 = vector.load %arg3[%c0_5, %c0_6] : memref<1x64xf32, #tpu.memory_space<vmem>>, vector<1x64xf32>
    %c0_7 = arith.constant 0 : index
    %c0_8 = arith.constant 0 : index
    %5 = vector.load %arg4[%c0_7, %c0_8] : memref<1x64xf32, #tpu.memory_space<vmem>>, vector<1x64xf32>
    %cst = arith.constant dense<0.000000e+00> : vector<16xf32>
    %6 = vector.multi_reduction <add>, %3, %cst [1] : vector<16x64xf32> to vector<16xf32>
    %7 = vector.shape_cast %6 : vector<16xf32> to vector<16x1xf32>
    %cst_9 = arith.constant 6.400000e+01 : f32
    %8 = vector.broadcast %cst_9 : f32 to vector<16x1xf32>
    %9 = arith.divf %7, %8 : vector<16x1xf32>
    %10 = vector.broadcast %9 : vector<16x1xf32> to vector<16x64xf32>
    %11 = arith.subf %3, %10 : vector<16x64xf32>
    %12 = arith.mulf %11, %11 : vector<16x64xf32>
    %cst_10 = arith.constant dense<0.000000e+00> : vector<16xf32>
    %13 = vector.multi_reduction <add>, %12, %cst_10 [1] : vector<16x64xf32> to vector<16xf32>
    %14 = vector.shape_cast %13 : vector<16xf32> to vector<16x1xf32>
    %cst_11 = arith.constant 6.400000e+01 : f32
    %15 = vector.broadcast %cst_11 : f32 to vector<16x1xf32>
    %16 = arith.divf %14, %15 : vector<16x1xf32>
    %cst_12 = arith.constant 9.99999996E-13 : f32
    %17 = vector.broadcast %cst_12 : f32 to vector<16x1xf32>
    %18 = arith.addf %16, %17 : vector<16x1xf32>
    %19 = math.rsqrt %18 : vector<16x1xf32>
    %20 = vector.broadcast %19 : vector<16x1xf32> to vector<16x64xf32>
    %21 = arith.mulf %11, %20 : vector<16x64xf32>
    %22 = vector.broadcast %4 : vector<1x64xf32> to vector<16x64xf32>
    %23 = arith.mulf %21, %22 : vector<16x64xf32>
    %24 = vector.broadcast %5 : vector<1x64xf32> to vector<16x64xf32>
    %25 = arith.addf %23, %24 : vector<16x64xf32>
    %26 = arith.truncf %25 : vector<16x64xf32> to vector<16x64xbf16>
    %c0_13 = arith.constant 0 : index
    %c0_14 = arith.constant 0 : index
    %c0_15 = arith.constant 0 : index
    %27 = vector.load %arg5[%c0_13, %c0_14, %c0_15] : memref<2x64x192xbf16, #tpu.memory_space<vmem>>, vector<1x64x192xbf16>
    %28 = vector.shape_cast %27 : vector<1x64x192xbf16> to vector<64x192xbf16>
    %cst_16 = arith.constant dense<0.000000e+00> : vector<16x192xf32>
    %29 = tpu.matmul %26, %28, %cst_16 {dimension_numbers = #tpu.dot_dimension_numbers<[1], [0], [0], [1], [0, 0, 1, 1], [], []>} : vector<16x64xbf16>, vector<64x192xbf16>, vector<16x192xf32> -> vector<16x192xf32>
    %c0_17 = arith.constant 0 : index
    %c0_18 = arith.constant 0 : index
    %c0_19 = arith.constant 0 : index
    %30 = vector.load %arg6[%c0_17, %c0_18, %c0_19] : memref<2x1x192xf32, #tpu.memory_space<vmem>>, vector<1x1x192xf32>
    %31 = vector.shape_cast %30 : vector<1x1x192xf32> to vector<1x192xf32>
    %32 = vector.broadcast %31 : vector<1x192xf32> to vector<16x192xf32>
    %33 = arith.addf %29, %32 : vector<16x192xf32>
    %34 = vector.extract_strided_slice %33 {offsets = [0, 0], sizes = [16, 64], strides = [1, 1]} : vector<16x192xf32> to vector<16x64xf32>
    %35 = vector.extract_strided_slice %33 {offsets = [0, 64], sizes = [16, 64], strides = [1, 1]} : vector<16x192xf32> to vector<16x64xf32>
    %36 = vector.extract_strided_slice %33 {offsets = [0, 128], sizes = [16, 64], strides = [1, 1]} : vector<16x192xf32> to vector<16x64xf32>
    %cst_20 = arith.constant 0.000000e+00 : f32
    %37 = vector.broadcast %cst_20 : f32 to vector<16x64xf32>
    %38 = vector.extract_strided_slice %34 {offsets = [0, 0], sizes = [16, 32], strides = [1, 1]} : vector<16x64xf32> to vector<16x32xf32>
    %39 = arith.truncf %38 : vector<16x32xf32> to vector<16x32xbf16>
    %40 = vector.extract_strided_slice %35 {offsets = [0, 0], sizes = [16, 32], strides = [1, 1]} : vector<16x64xf32> to vector<16x32xf32>
    %41 = arith.truncf %40 : vector<16x32xf32> to vector<16x32xbf16>
    %42 = vector.extract_strided_slice %36 {offsets = [0, 0], sizes = [16, 32], strides = [1, 1]} : vector<16x64xf32> to vector<16x32xf32>
    %43 = arith.truncf %42 : vector<16x32xf32> to vector<16x32xbf16>
    %cst_21 = arith.constant dense<0.000000e+00> : vector<16x16xf32>
    %44 = tpu.matmul %39, %41, %cst_21 {dimension_numbers = #tpu.dot_dimension_numbers<[1], [1], [0], [0], [0, 0, 1, 0], [], []>} : vector<16x32xbf16>, vector<16x32xbf16>, vector<16x16xf32> -> vector<16x16xf32>
    %cst_22 = arith.constant 0.176776692 : f32
    %45 = vector.broadcast %cst_22 : f32 to vector<16x16xf32>
    %46 = arith.mulf %44, %45 : vector<16x16xf32>
    %47 = vector.broadcast %1 : vector<1x16xf32> to vector<16x16xf32>
    %48 = arith.addf %46, %47 : vector<16x16xf32>
    %cst_23 = arith.constant dense<0xFF800000> : vector<16xf32>
    %49 = vector.multi_reduction <maximumf>, %48, %cst_23 [1] : vector<16x16xf32> to vector<16xf32>
    %50 = vector.shape_cast %49 : vector<16xf32> to vector<16x1xf32>
    %51 = vector.broadcast %50 : vector<16x1xf32> to vector<16x16xf32>
    %52 = arith.subf %48, %51 : vector<16x16xf32>
    %53 = math.exp %52 : vector<16x16xf32>
    %cst_24 = arith.constant dense<0.000000e+00> : vector<16xf32>
    %54 = vector.multi_reduction <add>, %53, %cst_24 [1] : vector<16x16xf32> to vector<16xf32>
    %55 = vector.shape_cast %54 : vector<16xf32> to vector<16x1xf32>
    %56 = tpu.reciprocal %55 {approx = true} : vector<16x1xf32> -> vector<16x1xf32>
    %57 = vector.broadcast %56 : vector<16x1xf32> to vector<16x16xf32>
    %58 = arith.mulf %53, %57 : vector<16x16xf32>
    %59 = arith.truncf %58 : vector<16x16xf32> to vector<16x16xbf16>
    %cst_25 = arith.constant dense<0.000000e+00> : vector<16x32xf32>
    %60 = tpu.matmul %59, %43, %cst_25 {dimension_numbers = #tpu.dot_dimension_numbers<[1], [0], [0], [1], [0, 0, 1, 1], [], []>} : vector<16x16xbf16>, vector<16x32xbf16>, vector<16x32xf32> -> vector<16x32xf32>
    %61 = arith.truncf %60 : vector<16x32xf32> to vector<16x32xbf16>
    %c0_26 = arith.constant 0 : index
    %c0_27 = arith.constant 0 : index
    %c0_28 = arith.constant 0 : index
    %62 = vector.load %arg7[%c0_26, %c0_27, %c0_28] : memref<2x64x64xbf16, #tpu.memory_space<vmem>>, vector<1x64x64xbf16>
    %63 = vector.shape_cast %62 : vector<1x64x64xbf16> to vector<64x64xbf16>
    %64 = vector.extract_strided_slice %63 {offsets = [0, 0], sizes = [32, 64], strides = [1, 1]} : vector<64x64xbf16> to vector<32x64xbf16>
    %cst_29 = arith.constant dense<0.000000e+00> : vector<16x64xf32>
    %65 = tpu.matmul %61, %64, %cst_29 {dimension_numbers = #tpu.dot_dimension_numbers<[1], [0], [0], [1], [0, 0, 1, 1], [], []>} : vector<16x32xbf16>, vector<32x64xbf16>, vector<16x64xf32> -> vector<16x64xf32>
    %66 = arith.addf %37, %65 : vector<16x64xf32>
    %67 = vector.extract_strided_slice %34 {offsets = [0, 32], sizes = [16, 32], strides = [1, 1]} : vector<16x64xf32> to vector<16x32xf32>
    %68 = arith.truncf %67 : vector<16x32xf32> to vector<16x32xbf16>
    %69 = vector.extract_strided_slice %35 {offsets = [0, 32], sizes = [16, 32], strides = [1, 1]} : vector<16x64xf32> to vector<16x32xf32>
    %70 = arith.truncf %69 : vector<16x32xf32> to vector<16x32xbf16>
    %71 = vector.extract_strided_slice %36 {offsets = [0, 32], sizes = [16, 32], strides = [1, 1]} : vector<16x64xf32> to vector<16x32xf32>
    %72 = arith.truncf %71 : vector<16x32xf32> to vector<16x32xbf16>
    %cst_30 = arith.constant dense<0.000000e+00> : vector<16x16xf32>
    %73 = tpu.matmul %68, %70, %cst_30 {dimension_numbers = #tpu.dot_dimension_numbers<[1], [1], [0], [0], [0, 0, 1, 0], [], []>} : vector<16x32xbf16>, vector<16x32xbf16>, vector<16x16xf32> -> vector<16x16xf32>
    %cst_31 = arith.constant 0.176776692 : f32
    %74 = vector.broadcast %cst_31 : f32 to vector<16x16xf32>
    %75 = arith.mulf %73, %74 : vector<16x16xf32>
    %76 = vector.broadcast %1 : vector<1x16xf32> to vector<16x16xf32>
    %77 = arith.addf %75, %76 : vector<16x16xf32>
    %cst_32 = arith.constant dense<0xFF800000> : vector<16xf32>
    %78 = vector.multi_reduction <maximumf>, %77, %cst_32 [1] : vector<16x16xf32> to vector<16xf32>
    %79 = vector.shape_cast %78 : vector<16xf32> to vector<16x1xf32>
    %80 = vector.broadcast %79 : vector<16x1xf32> to vector<16x16xf32>
    %81 = arith.subf %77, %80 : vector<16x16xf32>
    %82 = math.exp %81 : vector<16x16xf32>
    %cst_33 = arith.constant dense<0.000000e+00> : vector<16xf32>
    %83 = vector.multi_reduction <add>, %82, %cst_33 [1] : vector<16x16xf32> to vector<16xf32>
    %84 = vector.shape_cast %83 : vector<16xf32> to vector<16x1xf32>
    %85 = tpu.reciprocal %84 {approx = true} : vector<16x1xf32> -> vector<16x1xf32>
    %86 = vector.broadcast %85 : vector<16x1xf32> to vector<16x16xf32>
    %87 = arith.mulf %82, %86 : vector<16x16xf32>
    %88 = arith.truncf %87 : vector<16x16xf32> to vector<16x16xbf16>
    %cst_34 = arith.constant dense<0.000000e+00> : vector<16x32xf32>
    %89 = tpu.matmul %88, %72, %cst_34 {dimension_numbers = #tpu.dot_dimension_numbers<[1], [0], [0], [1], [0, 0, 1, 1], [], []>} : vector<16x16xbf16>, vector<16x32xbf16>, vector<16x32xf32> -> vector<16x32xf32>
    %90 = arith.truncf %89 : vector<16x32xf32> to vector<16x32xbf16>
    %c0_35 = arith.constant 0 : index
    %c0_36 = arith.constant 0 : index
    %c0_37 = arith.constant 0 : index
    %91 = vector.load %arg7[%c0_35, %c0_36, %c0_37] : memref<2x64x64xbf16, #tpu.memory_space<vmem>>, vector<1x64x64xbf16>
    %92 = vector.shape_cast %91 : vector<1x64x64xbf16> to vector<64x64xbf16>
    %93 = vector.extract_strided_slice %92 {offsets = [32, 0], sizes = [32, 64], strides = [1, 1]} : vector<64x64xbf16> to vector<32x64xbf16>
    %cst_38 = arith.constant dense<0.000000e+00> : vector<16x64xf32>
    %94 = tpu.matmul %90, %93, %cst_38 {dimension_numbers = #tpu.dot_dimension_numbers<[1], [0], [0], [1], [0, 0, 1, 1], [], []>} : vector<16x32xbf16>, vector<32x64xbf16>, vector<16x64xf32> -> vector<16x64xf32>
    %95 = arith.addf %66, %94 : vector<16x64xf32>
    %c0_39 = arith.constant 0 : index
    %c0_40 = arith.constant 0 : index
    %c0_41 = arith.constant 0 : index
    %96 = vector.load %arg8[%c0_39, %c0_40, %c0_41] : memref<2x1x64xf32, #tpu.memory_space<vmem>>, vector<1x1x64xf32>
    %97 = vector.shape_cast %96 : vector<1x1x64xf32> to vector<1x64xf32>
    %98 = vector.broadcast %97 : vector<1x64xf32> to vector<16x64xf32>
    %99 = arith.addf %95, %98 : vector<16x64xf32>
    %100 = arith.addf %99, %25 : vector<16x64xf32>
    %c0_42 = arith.constant 0 : index
    %c0_43 = arith.constant 0 : index
    %c0_44 = arith.constant 0 : index
    %101 = vector.load %arg9[%c0_42, %c0_43, %c0_44] : memref<2x1x64xf32, #tpu.memory_space<vmem>>, vector<1x1x64xf32>
    %102 = vector.shape_cast %101 : vector<1x1x64xf32> to vector<1x64xf32>
    %c0_45 = arith.constant 0 : index
    %c0_46 = arith.constant 0 : index
    %c0_47 = arith.constant 0 : index
    %103 = vector.load %arg10[%c0_45, %c0_46, %c0_47] : memref<2x1x64xf32, #tpu.memory_space<vmem>>, vector<1x1x64xf32>
    %104 = vector.shape_cast %103 : vector<1x1x64xf32> to vector<1x64xf32>
    %cst_48 = arith.constant dense<0.000000e+00> : vector<16xf32>
    %105 = vector.multi_reduction <add>, %100, %cst_48 [1] : vector<16x64xf32> to vector<16xf32>
    %106 = vector.shape_cast %105 : vector<16xf32> to vector<16x1xf32>
    %cst_49 = arith.constant 6.400000e+01 : f32
    %107 = vector.broadcast %cst_49 : f32 to vector<16x1xf32>
    %108 = arith.divf %106, %107 : vector<16x1xf32>
    %109 = vector.broadcast %108 : vector<16x1xf32> to vector<16x64xf32>
    %110 = arith.subf %100, %109 : vector<16x64xf32>
    %111 = arith.mulf %110, %110 : vector<16x64xf32>
    %cst_50 = arith.constant dense<0.000000e+00> : vector<16xf32>
    %112 = vector.multi_reduction <add>, %111, %cst_50 [1] : vector<16x64xf32> to vector<16xf32>
    %113 = vector.shape_cast %112 : vector<16xf32> to vector<16x1xf32>
    %cst_51 = arith.constant 6.400000e+01 : f32
    %114 = vector.broadcast %cst_51 : f32 to vector<16x1xf32>
    %115 = arith.divf %113, %114 : vector<16x1xf32>
    %cst_52 = arith.constant 9.99999996E-13 : f32
    %116 = vector.broadcast %cst_52 : f32 to vector<16x1xf32>
    %117 = arith.addf %115, %116 : vector<16x1xf32>
    %118 = math.rsqrt %117 : vector<16x1xf32>
    %119 = vector.broadcast %118 : vector<16x1xf32> to vector<16x64xf32>
    %120 = arith.mulf %110, %119 : vector<16x64xf32>
    %121 = vector.broadcast %102 : vector<1x64xf32> to vector<16x64xf32>
    %122 = arith.mulf %120, %121 : vector<16x64xf32>
    %123 = vector.broadcast %104 : vector<1x64xf32> to vector<16x64xf32>
    %124 = arith.addf %122, %123 : vector<16x64xf32>
    %125 = arith.truncf %124 : vector<16x64xf32> to vector<16x64xbf16>
    %c0_53 = arith.constant 0 : index
    %c0_54 = arith.constant 0 : index
    %c0_55 = arith.constant 0 : index
    %126 = vector.load %arg11[%c0_53, %c0_54, %c0_55] : memref<2x64x128xbf16, #tpu.memory_space<vmem>>, vector<1x64x128xbf16>
    %127 = vector.shape_cast %126 : vector<1x64x128xbf16> to vector<64x128xbf16>
    %cst_56 = arith.constant dense<0.000000e+00> : vector<16x128xf32>
    %128 = tpu.matmul %125, %127, %cst_56 {dimension_numbers = #tpu.dot_dimension_numbers<[1], [0], [0], [1], [0, 0, 1, 1], [], []>} : vector<16x64xbf16>, vector<64x128xbf16>, vector<16x128xf32> -> vector<16x128xf32>
    %c0_57 = arith.constant 0 : index
    %c0_58 = arith.constant 0 : index
    %c0_59 = arith.constant 0 : index
    %129 = vector.load %arg12[%c0_57, %c0_58, %c0_59] : memref<2x1x128xf32, #tpu.memory_space<vmem>>, vector<1x1x128xf32>
    %130 = vector.shape_cast %129 : vector<1x1x128xf32> to vector<1x128xf32>
    %131 = vector.broadcast %130 : vector<1x128xf32> to vector<16x128xf32>
    %132 = arith.addf %128, %131 : vector<16x128xf32>
    %cst_60 = arith.constant 5.000000e-01 : f32
    %133 = vector.broadcast %cst_60 : f32 to vector<16x128xf32>
    %134 = arith.mulf %132, %133 : vector<16x128xf32>
    %cst_61 = arith.constant 1.41421354 : f32
    %135 = vector.broadcast %cst_61 : f32 to vector<16x128xf32>
    %136 = arith.divf %132, %135 : vector<16x128xf32>
    %cst_62 = arith.constant -4.000000e+00 : f32
    %cst_63 = arith.constant 4.000000e+00 : f32
    %137 = vector.broadcast %cst_62 : f32 to vector<16x128xf32>
    %138 = arith.maximumf %137, %136 : vector<16x128xf32>
    %139 = vector.broadcast %cst_63 : f32 to vector<16x128xf32>
    %140 = arith.minimumf %139, %138 : vector<16x128xf32>
    %141 = arith.mulf %140, %140 : vector<16x128xf32>
    %cst_64 = arith.constant -2.72614237E-10 : f32
    %142 = vector.broadcast %cst_64 : f32 to vector<16x128xf32>
    %143 = arith.mulf %142, %141 : vector<16x128xf32>
    %cst_65 = arith.constant 2.77068146E-8 : f32
    %144 = vector.broadcast %cst_65 : f32 to vector<16x128xf32>
    %145 = arith.addf %143, %144 : vector<16x128xf32>
    %146 = arith.mulf %145, %141 : vector<16x128xf32>
    %cst_66 = arith.constant -2.10102394E-6 : f32
    %147 = vector.broadcast %cst_66 : f32 to vector<16x128xf32>
    %148 = arith.addf %146, %147 : vector<16x128xf32>
    %149 = arith.mulf %148, %141 : vector<16x128xf32>
    %cst_67 = arith.constant -5.69250624E-5 : f32
    %150 = vector.broadcast %cst_67 : f32 to vector<16x128xf32>
    %151 = arith.addf %149, %150 : vector<16x128xf32>
    %152 = arith.mulf %151, %141 : vector<16x128xf32>
    %cst_68 = arith.constant -7.34990637E-4 : f32
    %153 = vector.broadcast %cst_68 : f32 to vector<16x128xf32>
    %154 = arith.addf %152, %153 : vector<16x128xf32>
    %155 = arith.mulf %154, %141 : vector<16x128xf32>
    %cst_69 = arith.constant -2.954600e-03 : f32
    %156 = vector.broadcast %cst_69 : f32 to vector<16x128xf32>
    %157 = arith.addf %155, %156 : vector<16x128xf32>
    %158 = arith.mulf %157, %141 : vector<16x128xf32>
    %cst_70 = arith.constant -0.0160960332 : f32
    %159 = vector.broadcast %cst_70 : f32 to vector<16x128xf32>
    %160 = arith.addf %158, %159 : vector<16x128xf32>
    %cst_71 = arith.constant -1.45660715E-5 : f32
    %161 = vector.broadcast %cst_71 : f32 to vector<16x128xf32>
    %162 = arith.mulf %161, %141 : vector<16x128xf32>
    %cst_72 = arith.constant -2.13374049E-4 : f32
    %163 = vector.broadcast %cst_72 : f32 to vector<16x128xf32>
    %164 = arith.addf %162, %163 : vector<16x128xf32>
    %165 = arith.mulf %164, %141 : vector<16x128xf32>
    %cst_73 = arith.constant -0.00168282702 : f32
    %166 = vector.broadcast %cst_73 : f32 to vector<16x128xf32>
    %167 = arith.addf %165, %166 : vector<16x128xf32>
    %168 = arith.mulf %167, %141 : vector<16x128xf32>
    %cst_74 = arith.constant -0.00737332925 : f32
    %169 = vector.broadcast %cst_74 : f32 to vector<16x128xf32>
    %170 = arith.addf %168, %169 : vector<16x128xf32>
    %171 = arith.mulf %170, %141 : vector<16x128xf32>
    %cst_75 = arith.constant -0.0142647391 : f32
    %172 = vector.broadcast %cst_75 : f32 to vector<16x128xf32>
    %173 = arith.addf %171, %172 : vector<16x128xf32>
    %174 = arith.mulf %140, %160 : vector<16x128xf32>
    %175 = arith.divf %174, %173 : vector<16x128xf32>
    %cst_76 = arith.constant 1.000000e+00 : f32
    %176 = vector.broadcast %cst_76 : f32 to vector<16x128xf32>
    %177 = arith.addf %176, %175 : vector<16x128xf32>
    %178 = arith.mulf %134, %177 : vector<16x128xf32>
    %179 = arith.truncf %178 : vector<16x128xf32> to vector<16x128xbf16>
    %c0_77 = arith.constant 0 : index
    %c0_78 = arith.constant 0 : index
    %c0_79 = arith.constant 0 : index
    %180 = vector.load %arg13[%c0_77, %c0_78, %c0_79] : memref<2x128x64xbf16, #tpu.memory_space<vmem>>, vector<1x128x64xbf16>
    %181 = vector.shape_cast %180 : vector<1x128x64xbf16> to vector<128x64xbf16>
    %cst_80 = arith.constant dense<0.000000e+00> : vector<16x64xf32>
    %182 = tpu.matmul %179, %181, %cst_80 {dimension_numbers = #tpu.dot_dimension_numbers<[1], [0], [0], [1], [0, 0, 1, 1], [], []>} : vector<16x128xbf16>, vector<128x64xbf16>, vector<16x64xf32> -> vector<16x64xf32>
    %c0_81 = arith.constant 0 : index
    %c0_82 = arith.constant 0 : index
    %c0_83 = arith.constant 0 : index
    %183 = vector.load %arg14[%c0_81, %c0_82, %c0_83] : memref<2x1x64xf32, #tpu.memory_space<vmem>>, vector<1x1x64xf32>
    %184 = vector.shape_cast %183 : vector<1x1x64xf32> to vector<1x64xf32>
    %185 = vector.broadcast %184 : vector<1x64xf32> to vector<16x64xf32>
    %186 = arith.addf %182, %185 : vector<16x64xf32>
    %187 = arith.addf %186, %124 : vector<16x64xf32>
    %c0_84 = arith.constant 0 : index
    %c0_85 = arith.constant 0 : index
    %c0_86 = arith.constant 0 : index
    %188 = vector.load %arg15[%c0_84, %c0_85, %c0_86] : memref<2x1x64xf32, #tpu.memory_space<vmem>>, vector<1x1x64xf32>
    %189 = vector.shape_cast %188 : vector<1x1x64xf32> to vector<1x64xf32>
    %c0_87 = arith.constant 0 : index
    %c0_88 = arith.constant 0 : index
    %c0_89 = arith.constant 0 : index
    %190 = vector.load %arg16[%c0_87, %c0_88, %c0_89] : memref<2x1x64xf32, #tpu.memory_space<vmem>>, vector<1x1x64xf32>
    %191 = vector.shape_cast %190 : vector<1x1x64xf32> to vector<1x64xf32>
    %cst_90 = arith.constant dense<0.000000e+00> : vector<16xf32>
    %192 = vector.multi_reduction <add>, %187, %cst_90 [1] : vector<16x64xf32> to vector<16xf32>
    %193 = vector.shape_cast %192 : vector<16xf32> to vector<16x1xf32>
    %cst_91 = arith.constant 6.400000e+01 : f32
    %194 = vector.broadcast %cst_91 : f32 to vector<16x1xf32>
    %195 = arith.divf %193, %194 : vector<16x1xf32>
    %196 = vector.broadcast %195 : vector<16x1xf32> to vector<16x64xf32>
    %197 = arith.subf %187, %196 : vector<16x64xf32>
    %198 = arith.mulf %197, %197 : vector<16x64xf32>
    %cst_92 = arith.constant dense<0.000000e+00> : vector<16xf32>
    %199 = vector.multi_reduction <add>, %198, %cst_92 [1] : vector<16x64xf32> to vector<16xf32>
    %200 = vector.shape_cast %199 : vector<16xf32> to vector<16x1xf32>
    %cst_93 = arith.constant 6.400000e+01 : f32
    %201 = vector.broadcast %cst_93 : f32 to vector<16x1xf32>
    %202 = arith.divf %200, %201 : vector<16x1xf32>
    %cst_94 = arith.constant 9.99999996E-13 : f32
    %203 = vector.broadcast %cst_94 : f32 to vector<16x1xf32>
    %204 = arith.addf %202, %203 : vector<16x1xf32>
    %205 = math.rsqrt %204 : vector<16x1xf32>
    %206 = vector.broadcast %205 : vector<16x1xf32> to vector<16x64xf32>
    %207 = arith.mulf %197, %206 : vector<16x64xf32>
    %208 = vector.broadcast %189 : vector<1x64xf32> to vector<16x64xf32>
    %209 = arith.mulf %207, %208 : vector<16x64xf32>
    %210 = vector.broadcast %191 : vector<1x64xf32> to vector<16x64xf32>
    %211 = arith.addf %209, %210 : vector<16x64xf32>
    %212 = arith.truncf %211 : vector<16x64xf32> to vector<16x64xbf16>
    %c1 = arith.constant 1 : index
    %c0_95 = arith.constant 0 : index
    %c0_96 = arith.constant 0 : index
    %213 = vector.load %arg5[%c1, %c0_95, %c0_96] : memref<2x64x192xbf16, #tpu.memory_space<vmem>>, vector<1x64x192xbf16>
    %214 = vector.shape_cast %213 : vector<1x64x192xbf16> to vector<64x192xbf16>
    %cst_97 = arith.constant dense<0.000000e+00> : vector<16x192xf32>
    %215 = tpu.matmul %212, %214, %cst_97 {dimension_numbers = #tpu.dot_dimension_numbers<[1], [0], [0], [1], [0, 0, 1, 1], [], []>} : vector<16x64xbf16>, vector<64x192xbf16>, vector<16x192xf32> -> vector<16x192xf32>
    %c1_98 = arith.constant 1 : index
    %c0_99 = arith.constant 0 : index
    %c0_100 = arith.constant 0 : index
    %216 = vector.load %arg6[%c1_98, %c0_99, %c0_100] : memref<2x1x192xf32, #tpu.memory_space<vmem>>, vector<1x1x192xf32>
    %217 = vector.shape_cast %216 : vector<1x1x192xf32> to vector<1x192xf32>
    %218 = vector.broadcast %217 : vector<1x192xf32> to vector<16x192xf32>
    %219 = arith.addf %215, %218 : vector<16x192xf32>
    %220 = vector.extract_strided_slice %219 {offsets = [0, 0], sizes = [16, 64], strides = [1, 1]} : vector<16x192xf32> to vector<16x64xf32>
    %221 = vector.extract_strided_slice %219 {offsets = [0, 64], sizes = [16, 64], strides = [1, 1]} : vector<16x192xf32> to vector<16x64xf32>
    %222 = vector.extract_strided_slice %219 {offsets = [0, 128], sizes = [16, 64], strides = [1, 1]} : vector<16x192xf32> to vector<16x64xf32>
    %cst_101 = arith.constant 0.000000e+00 : f32
    %223 = vector.broadcast %cst_101 : f32 to vector<16x64xf32>
    %224 = vector.extract_strided_slice %220 {offsets = [0, 0], sizes = [16, 32], strides = [1, 1]} : vector<16x64xf32> to vector<16x32xf32>
    %225 = arith.truncf %224 : vector<16x32xf32> to vector<16x32xbf16>
    %226 = vector.extract_strided_slice %221 {offsets = [0, 0], sizes = [16, 32], strides = [1, 1]} : vector<16x64xf32> to vector<16x32xf32>
    %227 = arith.truncf %226 : vector<16x32xf32> to vector<16x32xbf16>
    %228 = vector.extract_strided_slice %222 {offsets = [0, 0], sizes = [16, 32], strides = [1, 1]} : vector<16x64xf32> to vector<16x32xf32>
    %229 = arith.truncf %228 : vector<16x32xf32> to vector<16x32xbf16>
    %cst_102 = arith.constant dense<0.000000e+00> : vector<16x16xf32>
    %230 = tpu.matmul %225, %227, %cst_102 {dimension_numbers = #tpu.dot_dimension_numbers<[1], [1], [0], [0], [0, 0, 1, 0], [], []>} : vector<16x32xbf16>, vector<16x32xbf16>, vector<16x16xf32> -> vector<16x16xf32>
    %cst_103 = arith.constant 0.176776692 : f32
    %231 = vector.broadcast %cst_103 : f32 to vector<16x16xf32>
    %232 = arith.mulf %230, %231 : vector<16x16xf32>
    %233 = vector.broadcast %1 : vector<1x16xf32> to vector<16x16xf32>
    %234 = arith.addf %232, %233 : vector<16x16xf32>
    %cst_104 = arith.constant dense<0xFF800000> : vector<16xf32>
    %235 = vector.multi_reduction <maximumf>, %234, %cst_104 [1] : vector<16x16xf32> to vector<16xf32>
    %236 = vector.shape_cast %235 : vector<16xf32> to vector<16x1xf32>
    %237 = vector.broadcast %236 : vector<16x1xf32> to vector<16x16xf32>
    %238 = arith.subf %234, %237 : vector<16x16xf32>
    %239 = math.exp %238 : vector<16x16xf32>
    %cst_105 = arith.constant dense<0.000000e+00> : vector<16xf32>
    %240 = vector.multi_reduction <add>, %239, %cst_105 [1] : vector<16x16xf32> to vector<16xf32>
    %241 = vector.shape_cast %240 : vector<16xf32> to vector<16x1xf32>
    %242 = tpu.reciprocal %241 {approx = true} : vector<16x1xf32> -> vector<16x1xf32>
    %243 = vector.broadcast %242 : vector<16x1xf32> to vector<16x16xf32>
    %244 = arith.mulf %239, %243 : vector<16x16xf32>
    %245 = arith.truncf %244 : vector<16x16xf32> to vector<16x16xbf16>
    %cst_106 = arith.constant dense<0.000000e+00> : vector<16x32xf32>
    %246 = tpu.matmul %245, %229, %cst_106 {dimension_numbers = #tpu.dot_dimension_numbers<[1], [0], [0], [1], [0, 0, 1, 1], [], []>} : vector<16x16xbf16>, vector<16x32xbf16>, vector<16x32xf32> -> vector<16x32xf32>
    %247 = arith.truncf %246 : vector<16x32xf32> to vector<16x32xbf16>
    %c1_107 = arith.constant 1 : index
    %c0_108 = arith.constant 0 : index
    %c0_109 = arith.constant 0 : index
    %248 = vector.load %arg7[%c1_107, %c0_108, %c0_109] : memref<2x64x64xbf16, #tpu.memory_space<vmem>>, vector<1x64x64xbf16>
    %249 = vector.shape_cast %248 : vector<1x64x64xbf16> to vector<64x64xbf16>
    %250 = vector.extract_strided_slice %249 {offsets = [0, 0], sizes = [32, 64], strides = [1, 1]} : vector<64x64xbf16> to vector<32x64xbf16>
    %cst_110 = arith.constant dense<0.000000e+00> : vector<16x64xf32>
    %251 = tpu.matmul %247, %250, %cst_110 {dimension_numbers = #tpu.dot_dimension_numbers<[1], [0], [0], [1], [0, 0, 1, 1], [], []>} : vector<16x32xbf16>, vector<32x64xbf16>, vector<16x64xf32> -> vector<16x64xf32>
    %252 = arith.addf %223, %251 : vector<16x64xf32>
    %253 = vector.extract_strided_slice %220 {offsets = [0, 32], sizes = [16, 32], strides = [1, 1]} : vector<16x64xf32> to vector<16x32xf32>
    %254 = arith.truncf %253 : vector<16x32xf32> to vector<16x32xbf16>
    %255 = vector.extract_strided_slice %221 {offsets = [0, 32], sizes = [16, 32], strides = [1, 1]} : vector<16x64xf32> to vector<16x32xf32>
    %256 = arith.truncf %255 : vector<16x32xf32> to vector<16x32xbf16>
    %257 = vector.extract_strided_slice %222 {offsets = [0, 32], sizes = [16, 32], strides = [1, 1]} : vector<16x64xf32> to vector<16x32xf32>
    %258 = arith.truncf %257 : vector<16x32xf32> to vector<16x32xbf16>
    %cst_111 = arith.constant dense<0.000000e+00> : vector<16x16xf32>
    %259 = tpu.matmul %254, %256, %cst_111 {dimension_numbers = #tpu.dot_dimension_numbers<[1], [1], [0], [0], [0, 0, 1, 0], [], []>} : vector<16x32xbf16>, vector<16x32xbf16>, vector<16x16xf32> -> vector<16x16xf32>
    %cst_112 = arith.constant 0.176776692 : f32
    %260 = vector.broadcast %cst_112 : f32 to vector<16x16xf32>
    %261 = arith.mulf %259, %260 : vector<16x16xf32>
    %262 = vector.broadcast %1 : vector<1x16xf32> to vector<16x16xf32>
    %263 = arith.addf %261, %262 : vector<16x16xf32>
    %cst_113 = arith.constant dense<0xFF800000> : vector<16xf32>
    %264 = vector.multi_reduction <maximumf>, %263, %cst_113 [1] : vector<16x16xf32> to vector<16xf32>
    %265 = vector.shape_cast %264 : vector<16xf32> to vector<16x1xf32>
    %266 = vector.broadcast %265 : vector<16x1xf32> to vector<16x16xf32>
    %267 = arith.subf %263, %266 : vector<16x16xf32>
    %268 = math.exp %267 : vector<16x16xf32>
    %cst_114 = arith.constant dense<0.000000e+00> : vector<16xf32>
    %269 = vector.multi_reduction <add>, %268, %cst_114 [1] : vector<16x16xf32> to vector<16xf32>
    %270 = vector.shape_cast %269 : vector<16xf32> to vector<16x1xf32>
    %271 = tpu.reciprocal %270 {approx = true} : vector<16x1xf32> -> vector<16x1xf32>
    %272 = vector.broadcast %271 : vector<16x1xf32> to vector<16x16xf32>
    %273 = arith.mulf %268, %272 : vector<16x16xf32>
    %274 = arith.truncf %273 : vector<16x16xf32> to vector<16x16xbf16>
    %cst_115 = arith.constant dense<0.000000e+00> : vector<16x32xf32>
    %275 = tpu.matmul %274, %258, %cst_115 {dimension_numbers = #tpu.dot_dimension_numbers<[1], [0], [0], [1], [0, 0, 1, 1], [], []>} : vector<16x16xbf16>, vector<16x32xbf16>, vector<16x32xf32> -> vector<16x32xf32>
    %276 = arith.truncf %275 : vector<16x32xf32> to vector<16x32xbf16>
    %c1_116 = arith.constant 1 : index
    %c0_117 = arith.constant 0 : index
    %c0_118 = arith.constant 0 : index
    %277 = vector.load %arg7[%c1_116, %c0_117, %c0_118] : memref<2x64x64xbf16, #tpu.memory_space<vmem>>, vector<1x64x64xbf16>
    %278 = vector.shape_cast %277 : vector<1x64x64xbf16> to vector<64x64xbf16>
    %279 = vector.extract_strided_slice %278 {offsets = [32, 0], sizes = [32, 64], strides = [1, 1]} : vector<64x64xbf16> to vector<32x64xbf16>
    %cst_119 = arith.constant dense<0.000000e+00> : vector<16x64xf32>
    %280 = tpu.matmul %276, %279, %cst_119 {dimension_numbers = #tpu.dot_dimension_numbers<[1], [0], [0], [1], [0, 0, 1, 1], [], []>} : vector<16x32xbf16>, vector<32x64xbf16>, vector<16x64xf32> -> vector<16x64xf32>
    %281 = arith.addf %252, %280 : vector<16x64xf32>
    %c1_120 = arith.constant 1 : index
    %c0_121 = arith.constant 0 : index
    %c0_122 = arith.constant 0 : index
    %282 = vector.load %arg8[%c1_120, %c0_121, %c0_122] : memref<2x1x64xf32, #tpu.memory_space<vmem>>, vector<1x1x64xf32>
    %283 = vector.shape_cast %282 : vector<1x1x64xf32> to vector<1x64xf32>
    %284 = vector.broadcast %283 : vector<1x64xf32> to vector<16x64xf32>
    %285 = arith.addf %281, %284 : vector<16x64xf32>
    %286 = arith.addf %285, %211 : vector<16x64xf32>
    %c1_123 = arith.constant 1 : index
    %c0_124 = arith.constant 0 : index
    %c0_125 = arith.constant 0 : index
    %287 = vector.load %arg9[%c1_123, %c0_124, %c0_125] : memref<2x1x64xf32, #tpu.memory_space<vmem>>, vector<1x1x64xf32>
    %288 = vector.shape_cast %287 : vector<1x1x64xf32> to vector<1x64xf32>
    %c1_126 = arith.constant 1 : index
    %c0_127 = arith.constant 0 : index
    %c0_128 = arith.constant 0 : index
    %289 = vector.load %arg10[%c1_126, %c0_127, %c0_128] : memref<2x1x64xf32, #tpu.memory_space<vmem>>, vector<1x1x64xf32>
    %290 = vector.shape_cast %289 : vector<1x1x64xf32> to vector<1x64xf32>
    %cst_129 = arith.constant dense<0.000000e+00> : vector<16xf32>
    %291 = vector.multi_reduction <add>, %286, %cst_129 [1] : vector<16x64xf32> to vector<16xf32>
    %292 = vector.shape_cast %291 : vector<16xf32> to vector<16x1xf32>
    %cst_130 = arith.constant 6.400000e+01 : f32
    %293 = vector.broadcast %cst_130 : f32 to vector<16x1xf32>
    %294 = arith.divf %292, %293 : vector<16x1xf32>
    %295 = vector.broadcast %294 : vector<16x1xf32> to vector<16x64xf32>
    %296 = arith.subf %286, %295 : vector<16x64xf32>
    %297 = arith.mulf %296, %296 : vector<16x64xf32>
    %cst_131 = arith.constant dense<0.000000e+00> : vector<16xf32>
    %298 = vector.multi_reduction <add>, %297, %cst_131 [1] : vector<16x64xf32> to vector<16xf32>
    %299 = vector.shape_cast %298 : vector<16xf32> to vector<16x1xf32>
    %cst_132 = arith.constant 6.400000e+01 : f32
    %300 = vector.broadcast %cst_132 : f32 to vector<16x1xf32>
    %301 = arith.divf %299, %300 : vector<16x1xf32>
    %cst_133 = arith.constant 9.99999996E-13 : f32
    %302 = vector.broadcast %cst_133 : f32 to vector<16x1xf32>
    %303 = arith.addf %301, %302 : vector<16x1xf32>
    %304 = math.rsqrt %303 : vector<16x1xf32>
    %305 = vector.broadcast %304 : vector<16x1xf32> to vector<16x64xf32>
    %306 = arith.mulf %296, %305 : vector<16x64xf32>
    %307 = vector.broadcast %288 : vector<1x64xf32> to vector<16x64xf32>
    %308 = arith.mulf %306, %307 : vector<16x64xf32>
    %309 = vector.broadcast %290 : vector<1x64xf32> to vector<16x64xf32>
    %310 = arith.addf %308, %309 : vector<16x64xf32>
    %311 = arith.truncf %310 : vector<16x64xf32> to vector<16x64xbf16>
    %c1_134 = arith.constant 1 : index
    %c0_135 = arith.constant 0 : index
    %c0_136 = arith.constant 0 : index
    %312 = vector.load %arg11[%c1_134, %c0_135, %c0_136] : memref<2x64x128xbf16, #tpu.memory_space<vmem>>, vector<1x64x128xbf16>
    %313 = vector.shape_cast %312 : vector<1x64x128xbf16> to vector<64x128xbf16>
    %cst_137 = arith.constant dense<0.000000e+00> : vector<16x128xf32>
    %314 = tpu.matmul %311, %313, %cst_137 {dimension_numbers = #tpu.dot_dimension_numbers<[1], [0], [0], [1], [0, 0, 1, 1], [], []>} : vector<16x64xbf16>, vector<64x128xbf16>, vector<16x128xf32> -> vector<16x128xf32>
    %c1_138 = arith.constant 1 : index
    %c0_139 = arith.constant 0 : index
    %c0_140 = arith.constant 0 : index
    %315 = vector.load %arg12[%c1_138, %c0_139, %c0_140] : memref<2x1x128xf32, #tpu.memory_space<vmem>>, vector<1x1x128xf32>
    %316 = vector.shape_cast %315 : vector<1x1x128xf32> to vector<1x128xf32>
    %317 = vector.broadcast %316 : vector<1x128xf32> to vector<16x128xf32>
    %318 = arith.addf %314, %317 : vector<16x128xf32>
    %cst_141 = arith.constant 5.000000e-01 : f32
    %319 = vector.broadcast %cst_141 : f32 to vector<16x128xf32>
    %320 = arith.mulf %318, %319 : vector<16x128xf32>
    %cst_142 = arith.constant 1.41421354 : f32
    %321 = vector.broadcast %cst_142 : f32 to vector<16x128xf32>
    %322 = arith.divf %318, %321 : vector<16x128xf32>
    %cst_143 = arith.constant -4.000000e+00 : f32
    %cst_144 = arith.constant 4.000000e+00 : f32
    %323 = vector.broadcast %cst_143 : f32 to vector<16x128xf32>
    %324 = arith.maximumf %323, %322 : vector<16x128xf32>
    %325 = vector.broadcast %cst_144 : f32 to vector<16x128xf32>
    %326 = arith.minimumf %325, %324 : vector<16x128xf32>
    %327 = arith.mulf %326, %326 : vector<16x128xf32>
    %cst_145 = arith.constant -2.72614237E-10 : f32
    %328 = vector.broadcast %cst_145 : f32 to vector<16x128xf32>
    %329 = arith.mulf %328, %327 : vector<16x128xf32>
    %cst_146 = arith.constant 2.77068146E-8 : f32
    %330 = vector.broadcast %cst_146 : f32 to vector<16x128xf32>
    %331 = arith.addf %329, %330 : vector<16x128xf32>
    %332 = arith.mulf %331, %327 : vector<16x128xf32>
    %cst_147 = arith.constant -2.10102394E-6 : f32
    %333 = vector.broadcast %cst_147 : f32 to vector<16x128xf32>
    %334 = arith.addf %332, %333 : vector<16x128xf32>
    %335 = arith.mulf %334, %327 : vector<16x128xf32>
    %cst_148 = arith.constant -5.69250624E-5 : f32
    %336 = vector.broadcast %cst_148 : f32 to vector<16x128xf32>
    %337 = arith.addf %335, %336 : vector<16x128xf32>
    %338 = arith.mulf %337, %327 : vector<16x128xf32>
    %cst_149 = arith.constant -7.34990637E-4 : f32
    %339 = vector.broadcast %cst_149 : f32 to vector<16x128xf32>
    %340 = arith.addf %338, %339 : vector<16x128xf32>
    %341 = arith.mulf %340, %327 : vector<16x128xf32>
    %cst_150 = arith.constant -2.954600e-03 : f32
    %342 = vector.broadcast %cst_150 : f32 to vector<16x128xf32>
    %343 = arith.addf %341, %342 : vector<16x128xf32>
    %344 = arith.mulf %343, %327 : vector<16x128xf32>
    %cst_151 = arith.constant -0.0160960332 : f32
    %345 = vector.broadcast %cst_151 : f32 to vector<16x128xf32>
    %346 = arith.addf %344, %345 : vector<16x128xf32>
    %cst_152 = arith.constant -1.45660715E-5 : f32
    %347 = vector.broadcast %cst_152 : f32 to vector<16x128xf32>
    %348 = arith.mulf %347, %327 : vector<16x128xf32>
    %cst_153 = arith.constant -2.13374049E-4 : f32
    %349 = vector.broadcast %cst_153 : f32 to vector<16x128xf32>
    %350 = arith.addf %348, %349 : vector<16x128xf32>
    %351 = arith.mulf %350, %327 : vector<16x128xf32>
    %cst_154 = arith.constant -0.00168282702 : f32
    %352 = vector.broadcast %cst_154 : f32 to vector<16x128xf32>
    %353 = arith.addf %351, %352 : vector<16x128xf32>
    %354 = arith.mulf %353, %327 : vector<16x128xf32>
    %cst_155 = arith.constant -0.00737332925 : f32
    %355 = vector.broadcast %cst_155 : f32 to vector<16x128xf32>
    %356 = arith.addf %354, %355 : vector<16x128xf32>
    %357 = arith.mulf %356, %327 : vector<16x128xf32>
    %cst_156 = arith.constant -0.0142647391 : f32
    %358 = vector.broadcast %cst_156 : f32 to vector<16x128xf32>
    %359 = arith.addf %357, %358 : vector<16x128xf32>
    %360 = arith.mulf %326, %346 : vector<16x128xf32>
    %361 = arith.divf %360, %359 : vector<16x128xf32>
    %cst_157 = arith.constant 1.000000e+00 : f32
    %362 = vector.broadcast %cst_157 : f32 to vector<16x128xf32>
    %363 = arith.addf %362, %361 : vector<16x128xf32>
    %364 = arith.mulf %320, %363 : vector<16x128xf32>
    %365 = arith.truncf %364 : vector<16x128xf32> to vector<16x128xbf16>
    %c1_158 = arith.constant 1 : index
    %c0_159 = arith.constant 0 : index
    %c0_160 = arith.constant 0 : index
    %366 = vector.load %arg13[%c1_158, %c0_159, %c0_160] : memref<2x128x64xbf16, #tpu.memory_space<vmem>>, vector<1x128x64xbf16>
    %367 = vector.shape_cast %366 : vector<1x128x64xbf16> to vector<128x64xbf16>
    %cst_161 = arith.constant dense<0.000000e+00> : vector<16x64xf32>
    %368 = tpu.matmul %365, %367, %cst_161 {dimension_numbers = #tpu.dot_dimension_numbers<[1], [0], [0], [1], [0, 0, 1, 1], [], []>} : vector<16x128xbf16>, vector<128x64xbf16>, vector<16x64xf32> -> vector<16x64xf32>
    %c1_162 = arith.constant 1 : index
    %c0_163 = arith.constant 0 : index
    %c0_164 = arith.constant 0 : index
    %369 = vector.load %arg14[%c1_162, %c0_163, %c0_164] : memref<2x1x64xf32, #tpu.memory_space<vmem>>, vector<1x1x64xf32>
    %370 = vector.shape_cast %369 : vector<1x1x64xf32> to vector<1x64xf32>
    %371 = vector.broadcast %370 : vector<1x64xf32> to vector<16x64xf32>
    %372 = arith.addf %368, %371 : vector<16x64xf32>
    %373 = arith.addf %372, %310 : vector<16x64xf32>
    %c1_165 = arith.constant 1 : index
    %c0_166 = arith.constant 0 : index
    %c0_167 = arith.constant 0 : index
    %374 = vector.load %arg15[%c1_165, %c0_166, %c0_167] : memref<2x1x64xf32, #tpu.memory_space<vmem>>, vector<1x1x64xf32>
    %375 = vector.shape_cast %374 : vector<1x1x64xf32> to vector<1x64xf32>
    %c1_168 = arith.constant 1 : index
    %c0_169 = arith.constant 0 : index
    %c0_170 = arith.constant 0 : index
    %376 = vector.load %arg16[%c1_168, %c0_169, %c0_170] : memref<2x1x64xf32, #tpu.memory_space<vmem>>, vector<1x1x64xf32>
    %377 = vector.shape_cast %376 : vector<1x1x64xf32> to vector<1x64xf32>
    %cst_171 = arith.constant dense<0.000000e+00> : vector<16xf32>
    %378 = vector.multi_reduction <add>, %373, %cst_171 [1] : vector<16x64xf32> to vector<16xf32>
    %379 = vector.shape_cast %378 : vector<16xf32> to vector<16x1xf32>
    %cst_172 = arith.constant 6.400000e+01 : f32
    %380 = vector.broadcast %cst_172 : f32 to vector<16x1xf32>
    %381 = arith.divf %379, %380 : vector<16x1xf32>
    %382 = vector.broadcast %381 : vector<16x1xf32> to vector<16x64xf32>
    %383 = arith.subf %373, %382 : vector<16x64xf32>
    %384 = arith.mulf %383, %383 : vector<16x64xf32>
    %cst_173 = arith.constant dense<0.000000e+00> : vector<16xf32>
    %385 = vector.multi_reduction <add>, %384, %cst_173 [1] : vector<16x64xf32> to vector<16xf32>
    %386 = vector.shape_cast %385 : vector<16xf32> to vector<16x1xf32>
    %cst_174 = arith.constant 6.400000e+01 : f32
    %387 = vector.broadcast %cst_174 : f32 to vector<16x1xf32>
    %388 = arith.divf %386, %387 : vector<16x1xf32>
    %cst_175 = arith.constant 9.99999996E-13 : f32
    %389 = vector.broadcast %cst_175 : f32 to vector<16x1xf32>
    %390 = arith.addf %388, %389 : vector<16x1xf32>
    %391 = math.rsqrt %390 : vector<16x1xf32>
    %392 = vector.broadcast %391 : vector<16x1xf32> to vector<16x64xf32>
    %393 = arith.mulf %383, %392 : vector<16x64xf32>
    %394 = vector.broadcast %375 : vector<1x64xf32> to vector<16x64xf32>
    %395 = arith.mulf %393, %394 : vector<16x64xf32>
    %396 = vector.broadcast %377 : vector<1x64xf32> to vector<16x64xf32>
    %397 = arith.addf %395, %396 : vector<16x64xf32>
    %398 = arith.truncf %397 : vector<16x64xf32> to vector<16x64xbf16>
    %c0_176 = arith.constant 0 : index
    %c0_177 = arith.constant 0 : index
    %399 = vector.load %arg17[%c0_176, %c0_177] : memref<64x64xbf16, #tpu.memory_space<vmem>>, vector<64x64xbf16>
    %cst_178 = arith.constant dense<0.000000e+00> : vector<16x64xf32>
    %400 = tpu.matmul %398, %399, %cst_178 {dimension_numbers = #tpu.dot_dimension_numbers<[1], [0], [0], [1], [0, 0, 1, 1], [], []>} : vector<16x64xbf16>, vector<64x64xbf16>, vector<16x64xf32> -> vector<16x64xf32>
    %c0_179 = arith.constant 0 : index
    %c0_180 = arith.constant 0 : index
    %401 = vector.load %arg18[%c0_179, %c0_180] : memref<1x64xf32, #tpu.memory_space<vmem>>, vector<1x64xf32>
    %402 = vector.broadcast %401 : vector<1x64xf32> to vector<16x64xf32>
    %403 = arith.addf %400, %402 : vector<16x64xf32>
    %cst_181 = arith.constant 5.000000e-01 : f32
    %404 = vector.broadcast %cst_181 : f32 to vector<16x64xf32>
    %405 = arith.mulf %403, %404 : vector<16x64xf32>
    %cst_182 = arith.constant 1.41421354 : f32
    %406 = vector.broadcast %cst_182 : f32 to vector<16x64xf32>
    %407 = arith.divf %403, %406 : vector<16x64xf32>
    %cst_183 = arith.constant -4.000000e+00 : f32
    %cst_184 = arith.constant 4.000000e+00 : f32
    %408 = vector.broadcast %cst_183 : f32 to vector<16x64xf32>
    %409 = arith.maximumf %408, %407 : vector<16x64xf32>
    %410 = vector.broadcast %cst_184 : f32 to vector<16x64xf32>
    %411 = arith.minimumf %410, %409 : vector<16x64xf32>
    %412 = arith.mulf %411, %411 : vector<16x64xf32>
    %cst_185 = arith.constant -2.72614237E-10 : f32
    %413 = vector.broadcast %cst_185 : f32 to vector<16x64xf32>
    %414 = arith.mulf %413, %412 : vector<16x64xf32>
    %cst_186 = arith.constant 2.77068146E-8 : f32
    %415 = vector.broadcast %cst_186 : f32 to vector<16x64xf32>
    %416 = arith.addf %414, %415 : vector<16x64xf32>
    %417 = arith.mulf %416, %412 : vector<16x64xf32>
    %cst_187 = arith.constant -2.10102394E-6 : f32
    %418 = vector.broadcast %cst_187 : f32 to vector<16x64xf32>
    %419 = arith.addf %417, %418 : vector<16x64xf32>
    %420 = arith.mulf %419, %412 : vector<16x64xf32>
    %cst_188 = arith.constant -5.69250624E-5 : f32
    %421 = vector.broadcast %cst_188 : f32 to vector<16x64xf32>
    %422 = arith.addf %420, %421 : vector<16x64xf32>
    %423 = arith.mulf %422, %412 : vector<16x64xf32>
    %cst_189 = arith.constant -7.34990637E-4 : f32
    %424 = vector.broadcast %cst_189 : f32 to vector<16x64xf32>
    %425 = arith.addf %423, %424 : vector<16x64xf32>
    %426 = arith.mulf %425, %412 : vector<16x64xf32>
    %cst_190 = arith.constant -2.954600e-03 : f32
    %427 = vector.broadcast %cst_190 : f32 to vector<16x64xf32>
    %428 = arith.addf %426, %427 : vector<16x64xf32>
    %429 = arith.mulf %428, %412 : vector<16x64xf32>
    %cst_191 = arith.constant -0.0160960332 : f32
    %430 = vector.broadcast %cst_191 : f32 to vector<16x64xf32>
    %431 = arith.addf %429, %430 : vector<16x64xf32>
    %cst_192 = arith.constant -1.45660715E-5 : f32
    %432 = vector.broadcast %cst_192 : f32 to vector<16x64xf32>
    %433 = arith.mulf %432, %412 : vector<16x64xf32>
    %cst_193 = arith.constant -2.13374049E-4 : f32
    %434 = vector.broadcast %cst_193 : f32 to vector<16x64xf32>
    %435 = arith.addf %433, %434 : vector<16x64xf32>
    %436 = arith.mulf %435, %412 : vector<16x64xf32>
    %cst_194 = arith.constant -0.00168282702 : f32
    %437 = vector.broadcast %cst_194 : f32 to vector<16x64xf32>
    %438 = arith.addf %436, %437 : vector<16x64xf32>
    %439 = arith.mulf %438, %412 : vector<16x64xf32>
    %cst_195 = arith.constant -0.00737332925 : f32
    %440 = vector.broadcast %cst_195 : f32 to vector<16x64xf32>
    %441 = arith.addf %439, %440 : vector<16x64xf32>
    %442 = arith.mulf %441, %412 : vector<16x64xf32>
    %cst_196 = arith.constant -0.0142647391 : f32
    %443 = vector.broadcast %cst_196 : f32 to vector<16x64xf32>
    %444 = arith.addf %442, %443 : vector<16x64xf32>
    %445 = arith.mulf %411, %431 : vector<16x64xf32>
    %446 = arith.divf %445, %444 : vector<16x64xf32>
    %cst_197 = arith.constant 1.000000e+00 : f32
    %447 = vector.broadcast %cst_197 : f32 to vector<16x64xf32>
    %448 = arith.addf %447, %446 : vector<16x64xf32>
    %449 = arith.mulf %405, %448 : vector<16x64xf32>
    %c0_198 = arith.constant 0 : index
    %c0_199 = arith.constant 0 : index
    %450 = vector.load %arg19[%c0_198, %c0_199] : memref<1x64xf32, #tpu.memory_space<vmem>>, vector<1x64xf32>
    %c0_200 = arith.constant 0 : index
    %c0_201 = arith.constant 0 : index
    %451 = vector.load %arg20[%c0_200, %c0_201] : memref<1x64xf32, #tpu.memory_space<vmem>>, vector<1x64xf32>
    %cst_202 = arith.constant dense<0.000000e+00> : vector<16xf32>
    %452 = vector.multi_reduction <add>, %449, %cst_202 [1] : vector<16x64xf32> to vector<16xf32>
    %453 = vector.shape_cast %452 : vector<16xf32> to vector<16x1xf32>
    %cst_203 = arith.constant 6.400000e+01 : f32
    %454 = vector.broadcast %cst_203 : f32 to vector<16x1xf32>
    %455 = arith.divf %453, %454 : vector<16x1xf32>
    %456 = vector.broadcast %455 : vector<16x1xf32> to vector<16x64xf32>
    %457 = arith.subf %449, %456 : vector<16x64xf32>
    %458 = arith.mulf %457, %457 : vector<16x64xf32>
    %cst_204 = arith.constant dense<0.000000e+00> : vector<16xf32>
    %459 = vector.multi_reduction <add>, %458, %cst_204 [1] : vector<16x64xf32> to vector<16xf32>
    %460 = vector.shape_cast %459 : vector<16xf32> to vector<16x1xf32>
    %cst_205 = arith.constant 6.400000e+01 : f32
    %461 = vector.broadcast %cst_205 : f32 to vector<16x1xf32>
    %462 = arith.divf %460, %461 : vector<16x1xf32>
    %cst_206 = arith.constant 9.99999996E-13 : f32
    %463 = vector.broadcast %cst_206 : f32 to vector<16x1xf32>
    %464 = arith.addf %462, %463 : vector<16x1xf32>
    %465 = math.rsqrt %464 : vector<16x1xf32>
    %466 = vector.broadcast %465 : vector<16x1xf32> to vector<16x64xf32>
    %467 = arith.mulf %457, %466 : vector<16x64xf32>
    %468 = vector.broadcast %450 : vector<1x64xf32> to vector<16x64xf32>
    %469 = arith.mulf %467, %468 : vector<16x64xf32>
    %470 = vector.broadcast %451 : vector<1x64xf32> to vector<16x64xf32>
    %471 = arith.addf %469, %470 : vector<16x64xf32>
    %472 = arith.truncf %471 : vector<16x64xf32> to vector<16x64xbf16>
    %c0_207 = arith.constant 0 : index
    %c0_208 = arith.constant 0 : index
    %473 = vector.load %arg21[%c0_207, %c0_208] : memref<64x128xbf16, #tpu.memory_space<vmem>>, vector<64x128xbf16>
    %cst_209 = arith.constant dense<0.000000e+00> : vector<16x128xf32>
    %474 = tpu.matmul %472, %473, %cst_209 {dimension_numbers = #tpu.dot_dimension_numbers<[1], [0], [0], [1], [0, 0, 1, 1], [], []>} : vector<16x64xbf16>, vector<64x128xbf16>, vector<16x128xf32> -> vector<16x128xf32>
    %c0_210 = arith.constant 0 : index
    %c0_211 = arith.constant 0 : index
    %475 = vector.load %arg22[%c0_210, %c0_211] : memref<1x128xf32, #tpu.memory_space<vmem>>, vector<1x128xf32>
    %476 = vector.broadcast %475 : vector<1x128xf32> to vector<16x128xf32>
    %477 = arith.addf %474, %476 : vector<16x128xf32>
    %c0_212 = arith.constant 0 : index
    %c0_213 = arith.constant 0 : index
    %c0_214 = arith.constant 0 : index
    %478 = vector.load %arg23[%c0_212, %c0_213, %c0_214] : memref<1x16x128xf32, #tpu.memory_space<vmem>>, vector<1x16x128xf32>
    %479 = vector.shape_cast %478 : vector<1x16x128xf32> to vector<16x128xf32>
    %480 = vector.shape_cast %477 : vector<16x128xf32> to vector<1x16x128xf32>
    tpu.vector_store %arg23[%c0_212, %c0_213, %c0_214], %480 {strides = array<i32>} : memref<1x16x128xf32, #tpu.memory_space<vmem>>, vector<1x16x128xf32>,
    return
  }
  func.func @transform_0(%arg0: i32) -> (i32, i32, i32) {
    %c0_i32 = arith.constant 0 : i32
    %c0_i32_0 = arith.constant 0 : i32
    %c0_i32_1 = arith.constant 0 : i32
    return %arg0, %c0_i32, %c0_i32_0 : i32, i32, i32
  }
  func.func @transform_1(%arg0: i32) -> (i32, i32, i32) {
    %c0_i32 = arith.constant 0 : i32
    %c0_i32_0 = arith.constant 0 : i32
    %c0_i32_1 = arith.constant 0 : i32
    return %arg0, %c0_i32, %c0_i32_0 : i32, i32, i32
  }
  func.func @transform_2(%arg0: i32) -> (i32, i32) {
    %c0_i32 = arith.constant 0 : i32
    %c0_i32_0 = arith.constant 0 : i32
    %c0_i32_1 = arith.constant 0 : i32
    return %c0_i32, %c0_i32_0 : i32, i32
  }
  func.func @transform_3(%arg0: i32) -> (i32, i32) {
    %c0_i32 = arith.constant 0 : i32
    %c0_i32_0 = arith.constant 0 : i32
    %c0_i32_1 = arith.constant 0 : i32
    return %c0_i32, %c0_i32_0 : i32, i32
  }
  func.func @transform_4(%arg0: i32) -> (i32, i32, i32) {
    %c0_i32 = arith.constant 0 : i32
    %c0_i32_0 = arith.constant 0 : i32
    %c0_i32_1 = arith.constant 0 : i32
    %c0_i32_2 = arith.constant 0 : i32
    return %c0_i32, %c0_i32_0, %c0_i32_1 : i32, i32, i32
  }
  func.func @transform_5(%arg0: i32) -> (i32, i32, i32) {
    %c0_i32 = arith.constant 0 : i32
    %c0_i32_0 = arith.constant 0 : i32
    %c0_i32_1 = arith.constant 0 : i32
    %c0_i32_2 = arith.constant 0 : i32
    return %c0_i32, %c0_i32_0, %c0_i32_1 : i32, i32, i32
  }
  func.func @transform_6(%arg0: i32) -> (i32, i32, i32) {
    %c0_i32 = arith.constant 0 : i32
    %c0_i32_0 = arith.constant 0 : i32
    %c0_i32_1 = arith.constant 0 : i32
    %c0_i32_2 = arith.constant 0 : i32
    return %c0_i32, %c0_i32_0, %c0_i32_1 : i32, i32, i32
  }
  func.func @transform_7(%arg0: i32) -> (i32, i32, i32) {
    %c0_i32 = arith.constant 0 : i32
    %c0_i32_0 = arith.constant 0 : i32
    %c0_i32_1 = arith.constant 0 : i32
    %c0_i32_2 = arith.constant 0 : i32
    return %c0_i32, %c0_i32_0, %c0_i32_1 : i32, i32, i32
  }
  func.func @transform_8(%arg0: i32) -> (i32, i32, i32) {
    %c0_i32 = arith.constant 0 : i32
    %c0_i32_0 = arith.constant 0 : i32
    %c0_i32_1 = arith.constant 0 : i32
    %c0_i32_2 = arith.constant 0 : i32
    return %c0_i32, %c0_i32_0, %c0_i32_1 : i32, i32, i32
  }
  func.func @transform_9(%arg0: i32) -> (i32, i32, i32) {
    %c0_i32 = arith.constant 0 : i32
    %c0_i32_0 = arith.constant 0 : i32
    %c0_i32_1 = arith.constant 0 : i32
    %c0_i32_2 = arith.constant 0 : i32
    return %c0_i32, %c0_i32_0, %c0_i32_1 : i32, i32, i32
  }
  func.func @transform_10(%arg0: i32) -> (i32, i32, i32) {
    %c0_i32 = arith.constant 0 : i32
    %c0_i32_0 = arith.constant 0 : i32
    %c0_i32_1 = arith.constant 0 : i32
    %c0_i32_2 = arith.constant 0 : i32
    return %c0_i32, %c0_i32_0, %c0_i32_1 : i32, i32, i32
  }
  func.func @transform_11(%arg0: i32) -> (i32, i32, i32) {
    %c0_i32 = arith.constant 0 : i32
    %c0_i32_0 = arith.constant 0 : i32
    %c0_i32_1 = arith.constant 0 : i32
    %c0_i32_2 = arith.constant 0 : i32
    return %c0_i32, %c0_i32_0, %c0_i32_1 : i32, i32, i32
  }
  func.func @transform_12(%arg0: i32) -> (i32, i32, i32) {
    %c0_i32 = arith.constant 0 : i32
    %c0_i32_0 = arith.constant 0 : i32
    %c0_i32_1 = arith.constant 0 : i32
    %c0_i32_2 = arith.constant 0 : i32
    return %c0_i32, %c0_i32_0, %c0_i32_1 : i32, i32, i32
  }
  func.func @transform_13(%arg0: i32) -> (i32, i32, i32) {
    %c0_i32 = arith.constant 0 : i32
    %c0_i32_0 = arith.constant 0 : i32
    %c0_i32_1 = arith.constant 0 : i32
    %c0_i32_2 = arith.constant 0 : i32
    return %c0_i32, %c0_i32_0, %c0_i32_1 : i32, i32, i32
  }
  func.func @transform_14(%arg0: i32) -> (i32, i32, i32) {
    %c0_i32 = arith.constant 0 : i32
    %c0_i32_0 = arith.constant 0 : i32
    %c0_i32_1 = arith.constant 0 : i32
    %c0_i32_2 = arith.constant 0 : i32
    return %c0_i32, %c0_i32_0, %c0_i32_1 : i32, i32, i32
  }
  func.func @transform_15(%arg0: i32) -> (i32, i32, i32) {
    %c0_i32 = arith.constant 0 : i32
    %c0_i32_0 = arith.constant 0 : i32
    %c0_i32_1 = arith.constant 0 : i32
    %c0_i32_2 = arith.constant 0 : i32
    return %c0_i32, %c0_i32_0, %c0_i32_1 : i32, i32, i32
  }
  func.func @transform_16(%arg0: i32) -> (i32, i32) {
    %c0_i32 = arith.constant 0 : i32
    %c0_i32_0 = arith.constant 0 : i32
    %c0_i32_1 = arith.constant 0 : i32
    return %c0_i32, %c0_i32_0 : i32, i32
  }
  func.func @transform_17(%arg0: i32) -> (i32, i32) {
    %c0_i32 = arith.constant 0 : i32
    %c0_i32_0 = arith.constant 0 : i32
    %c0_i32_1 = arith.constant 0 : i32
    return %c0_i32, %c0_i32_0 : i32, i32
  }
  func.func @transform_18(%arg0: i32) -> (i32, i32) {
    %c0_i32 = arith.constant 0 : i32
    %c0_i32_0 = arith.constant 0 : i32
    %c0_i32_1 = arith.constant 0 : i32
    return %c0_i32, %c0_i32_0 : i32, i32
  }
  func.func @transform_19(%arg0: i32) -> (i32, i32) {
    %c0_i32 = arith.constant 0 : i32
    %c0_i32_0 = arith.constant 0 : i32
    %c0_i32_1 = arith.constant 0 : i32
    return %c0_i32, %c0_i32_0 : i32, i32
  }
  func.func @transform_20(%arg0: i32) -> (i32, i32) {
    %c0_i32 = arith.constant 0 : i32
    %c0_i32_0 = arith.constant 0 : i32
    %c0_i32_1 = arith.constant 0 : i32
    return %c0_i32, %c0_i32_0 : i32, i32
  }
  func.func @transform_21(%arg0: i32) -> (i32, i32) {
    %c0_i32 = arith.constant 0 : i32
    %c0_i32_0 = arith.constant 0 : i32
    %c0_i32_1 = arith.constant 0 : i32
    return %c0_i32, %c0_i32_0 : i32, i32
  }
  func.func @transform_22(%arg0: i32) -> (i32, i32, i32) {
    %c0_i32 = arith.constant 0 : i32
    %c0_i32_0 = arith.constant 0 : i32
    %c0_i32_1 = arith.constant 0 : i32
    return %arg0, %c0_i32, %c0_i32_0 : i32, i32, i32
  }
}

</mosaic_0001>

<bundles_post_ra>
// kernel: generator_forward.1
= control target key start
LH: loop header
LB: loop body
LE: loop exit
PB: predicated region body
PF: predicated region fallthrough
CT: control target
= control target key end

     0   :  { %s4121_s0 = inlined_call_operand.vmem [shape: f32[2,16,64], index: 0, kind: input, shape index: {}]   ;;  %s4122_s1 = inlined_call_operand.vmem [shape: f32[2,1,16], index: 1, kind: input, shape index: {}]   ;;  %s4123_s2 = inlined_call_operand.vmem [shape: f32[1,64], index: 2, kind: input, shape index: {}, may-alias: {2,18}]   ;;  %s4124_s3 = inlined_call_operand.vmem [shape: f32[1,64], index: 3, kind: input, shape index: {}, may-alias: {3,17,19}]   ;;  %s4125_s4 = inlined_call_operand.vmem [shape: bf16[2,64,192], index: 4, kind: input, shape index: {}]   ;;  %s4126_s5 = inlined_call_operand.vmem [shape: f32[2,1,192], index: 5, kind: input, shape index: {}]   ;;  %s4127_s6 = inlined_call_operand.vmem [shape: bf16[2,64,64], index: 6, kind: input, shape index: {}]   ;;  %s4128_s7 = inlined_call_operand.vmem [shape: f32[2,1,64], index: 7, kind: input, shape index: {}, may-alias: {7,9,13,15}]   ;;  %s4129_s8 = inlined_call_operand.vmem [shape: f32[2,1,64], index: 8, kind: input, shape index: {}, may-alias: {8,14}]   ;;  %s4130_s9 = inlined_call_operand.vmem [shape: f32[2,1,64], index: 9, kind: input, shape index: {}, may-alias: {7,9,13,15}]   ;;  %s4131_s10 = inlined_call_operand.vmem [shape: bf16[2,64,128], index: 10, kind: input, shape index: {}]   ;;  %s4132_s11 = inlined_call_operand.vmem [shape: f32[2,1,128], index: 11, kind: input, shape index: {}]   ;;  %s4133_s12 = inlined_call_operand.vmem [shape: bf16[2,128,64], index: 12, kind: input, shape index: {}]   ;;  %s4134_s13 = inlined_call_operand.vmem [shape: f32[2,1,64], index: 13, kind: input, shape index: {}, may-alias: {7,9,13,15}]   ;;  %s4135_s14 = inlined_call_operand.vmem [shape: f32[2,1,64], index: 14, kind: input, shape index: {}, may-alias: {8,14}]   ;;  %s4136_s15 = inlined_call_operand.vmem [shape: f32[2,1,64], index: 15, kind: input, shape index: {}, may-alias: {7,9,13,15}]   ;;  %s4137_s16 = inlined_call_operand.vmem [shape: bf16[64,64], index: 16, kind: input, shape index: {}]   ;;  %s4138_s17 = inlined_call_operand.vmem [shape: f32[1,64], index: 17, kind: input, shape index: {}, may-alias: {3,17,19}]   ;;  %s4139_s18 = inlined_call_operand.vmem [shape: f32[1,64], index: 18, kind: input, shape index: {}, may-alias: {2,18}]   ;;  %s4140_s19 = inlined_call_operand.vmem [shape: f32[1,64], index: 19, kind: input, shape index: {}, may-alias: {3,17,19}]   ;;  %s4141_s20 = inlined_call_operand.vmem [shape: bf16[64,128], index: 20, kind: input, shape index: {}]   ;;  %s4142_s21 = inlined_call_operand.vmem [shape: f32[1,128], index: 21, kind: input, shape index: {}]   ;;  %s4143_s22 = inlined_call_operand.hbm [shape: f32[2,16,128], index: 22, kind: output, shape index: {}]  }
   0x1   :  { %4160 = sst [smem:[#allocation11_spill]] %s4121_s0 }
   0x2   :  { %4161 = sst [smem:[#allocation12_spill]] %s4122_s1 }
   0x3   :  { %4162 = sst [smem:[#allocation13_spill]] %s4123_s2 }
   0x4   :  { %4163 = sst [smem:[#allocation14_spill]] %s4124_s3 }
   0x5   :  { %4164 = sst [smem:[#allocation15_spill]] %s4125_s4 }
   0x6   :  { %4165 = sst [smem:[#allocation16_spill]] %s4126_s5 }
   0x7   :  { %4166 = sst [smem:[#allocation17_spill]] %s4127_s6 }
   0x8   :  { %4167 = sst [smem:[#allocation18_spill]] %s4128_s7 }
   0x9   :  { %4168 = sst [smem:[#allocation19_spill]] %s4143_s22 }
   0xa   :  { %27 = vsyncpa [#allocation3], 0 }
   0xb   :  { %29 = vsyncpa [#allocation3 + $0x1], 0  ;;  %s3560_s3 = smov 0   ;;  %s3562_s28 = smov 0  }
   0xc   :  { %s3564_s29 = smov 0   ;;  %s3566_s30 = smov 0  }
   0xd LB: > { %4169 = sst [smem:[#allocation5_spill]] %s3422_s3  ;;  %s3581_s4 = sadd.s32 4294967295, %s3434_s30   ;;  %s3434_s30 = sphi %s3566_s30, %s4194_s30   ;;  %s3430_s29 = sphi %s3564_s29, %s4196_s29   ;;  %s3426_s28 = sphi %s3562_s28, %s4198_s28   ;;  %s3422_s3 = sphi %s3560_s3, %s4197_s3  }
   0xe   : > { %4170 = sst [smem:[#allocation6_spill]] %s3430_s29  ;;  %s2798_s0 = sadd.s32 4294967294, %s3434_s30  }
   0xf   : > { %4171 = sst [smem:[#allocation7_spill]] %s3434_s30  ;;  %s3585_s23 = sadd.s32 1, %s3434_s30  }
  0x10   : > { %4172 = sst [smem:[#allocation8_spill]] %s3585_s23  ;;  %s514_s1 = sadd.s32 1, %s3430_s29 }
  0x11   : > { %s511_s5 = ssub.s32 %s3434_s30, %s3585_s23  ;;  %p524_p0 = scmp.ne.s32.totalorder %s3430_s29, %s3426_s28 }
  0x12   : > { %p512_p1 = scmp.eq.s32.totalorder %s511_s5, 0  ;;  %p525_p2 = scmp.eq.s32.totalorder %s3581_s4, 1 }
  0x13   : > { %p530_p3 = scmp.ne.s32.totalorder %s3426_s28, %s3422_s3  ;;  %p531_p4 = scmp.eq.s32.totalorder %s2798_s0, 1 }
  0x14   : > { %s3596_s24 = scalar_select %p512_p1, %s3430_s29, %s514_s1  }
  0x15   : > { %p3598_p5 = por %p525_p2, %p524_p0  ;;  %p3602_p6 = por %p531_p4, %p530_p3 }
  0x16   : > { %4173 = sst [smem:[#allocation9_spill]] %s3596_s24  ;;  %p2801_p7 = scmp.ge.s32.totalorder %s3434_s30, 1 }
  0x17   : > { %s4175_s25 = scalar_select %p3602_p6, 1, 0 }
  0x18   : > { %p623_p8 = scmp.lt.s32.totalorder %s3434_s30, 3 }
  0x19   : > { %4176 = sst [smem:[#allocation10_spill]] %s4175_s25 }
  0x1a   : > { %p624_p9 = pnand %p2801_p7, %p623_p8 }
  0x1b   : > { %p688_p10 = scmp.lt.s32.totalorder (!%p624_p9), %s3581_s4, 1  ;;  %s4177_s1 = sld [smem:[#allocation11_spill]] (!%p624_p9) }
  0x1c   : > { %627 = sbr.rel (%p624_p9) target bundleno = 6260 (0x1874), region = 108  ;;  %s4178_s0 = sld [smem:[#allocation15_spill]] (!%p624_p9) }
  0x1d   : > { %s4180_s24 = sld [smem:[#allocation14_spill]] (!%p624_p9)  ;;  %s4152_s27 = smov (!%p624_p9), 64  }
  0x1e   : > { %s4183_s29 = sld [smem:[#allocation17_spill]] (!%p624_p9)  ;;  %s4186_s3 = smov (!%p624_p9), 96  }
  0x1f   : > { %s4185_s7 = sld [smem:[#allocation18_spill]] (!%p624_p9)  ;;  %s2960_s25 = sshll.u32 (!%p624_p9), %s3581_s4, 8 }
  0x21   : > { %s3610_s26 = scalar_select %p688_p10, %s3581_s4, 1  ;;  %vm702_vm0 = vcmask 523264   ;;  %v3436_v18 = vmov 0   ;;  %v757_v40 = vlaneseq  ;;  %v3437_v42 = vmov 0.0  }
  0x22   : > { %v3242_v14 = vld [vmem:[%s4178_s0 + $0x34] ss:$8 sps:$4 sm:$0xff]   ;;  %v3244_v15 = vld [vmem:[%s4178_s0 + $0x30] ss:$8 sps:$4 sm:$0xff]   ;;  %v3245_v16 = vld [vmem:[%s4178_s0 + $0x24] ss:$8 sps:$4 sm:$0xff]   ;;  %842 = vmatprep.mubr.bf16.mxu0 %v3436_v18  ;;  %3027 = vmatprep.subr.bf16.mxu1 %v3437_v42 }
  0x23   : > { %s2959_s2 = sshll.u32 %s3610_s26, 4  ;;  %818 = vmatprep.subr.bf16.mxu0 %v3242_v14  ;;  %v3247_v17 = vld [vmem:[%s4178_s0 + $0x20] ss:$8 sps:$4 sm:$0xff]   ;;  %v3248_v19 = vld [vmem:[%s4178_s0 + $0x14] ss:$8 sps:$4 sm:$0xff]   ;;  %v3658_v41 = vshrl.u32 %v757_v40, 7 }
  0x24   : > { %s692_s5 = scalar_lea.vmem %s4177_s1, %s2959_s2  ;;  %819 = vmatpush1.bf16.msra.mxu0 %v3244_v15  ;;  %v3250_v20 = vld [vmem:[%s4178_s0 + $0x10] ss:$8 sps:$4 sm:$0xff]   ;;  %v3251_v21 = vld [vmem:[%s4178_s0 + $0x4] ss:$8 sps:$4 sm:$0xff]   ;;  %v3253_v22 = vld [vmem:[%s4178_s0] ss:$8 sps:$4 sm:$0xff]  }
  0x25   : > { %v698_v0 = vld [vmem:[%s692_s5] sm:$0xff]  ;;  %v699_v1 = vld [vmem:[%s692_s5 + $0x8] sm:$0xff]  ;;  %820 = vmatprep.subr.bf16.mxu0 %v3245_v16  ;;  %s4179_s1 = sld [smem:[#allocation13_spill]]  ;;  %v759_v43 = vsub.s32 0, %v3658_v41  ;;  %vm3438_vm1 = vmmov 0   ;;  %v763_v52 = vsub.s32 1, %v3658_v41 }
  0x26   : > { %v703_v2 = vsel %vm702_vm0, %v698_v0, 0.0  ;;  %v706_v3 = vsel %vm702_vm0, %v699_v1, 0.0  ;;  %v2806_v35 = vld [vmem:[%s4180_s24] ss:$0 sm:$0xff]  ;;  %s4181_s2 = sld [smem:[#allocation16_spill]]  ;;  %3029 = vmatprep.mubr.msk.bf16.mxu1 %vm3438_vm1, %v3437_v42  ;;  %vm858_vm2 = vcmask 261120  }
  0x27   : > { %704 = vadd.xlane.f32.xlu0 %v703_v2  ;;  %s4182_s24 = sld [smem:[#allocation12_spill]]  ;;  %vm916_vm3 = vcmask 130048   ;;  %s3442_s4 = smov [#allocation2]  }
  0x28   : > { %821 = vmatpush1.bf16.msra.mxu0 %v3247_v17  ;;  %s3378_s22 = sshll.u32 %s3442_s4, 4  ;;  %s3379_s22 = int_to_ptr.vmem [resolvable:$false] %s3378_s22 }
  0x29   : > { %822 = vmatprep.subr.bf16.mxu0 %v3248_v19 }
  0x2b   : > { %707 = vadd.xlane.f32.xlu0 %v706_v3  ;;  %v2805_v31 = vld [vmem:[%s4179_s1] ss:$0 sm:$0xff]  ;;  %s4153_s1 = smov 96  }
  0x2c   : > { %823 = vmatpush1.bf16.msra.mxu0 %v3250_v20  ;;  %v755_v44 = vld [vmem:[%s4181_s2] sm:$0x3] }
  0x2d   : > { %824 = vmatprep.subr.bf16.mxu0 %v3251_v21  ;;  %v760_v46 = vrot.slane %v755_v44, %v759_v43  ;;  %v764_v56 = vrot.slane %v755_v44, %v763_v52  ;;  %s695_s23 = scalar_lea.vmem %s4182_s24, %s3610_s26  ;;  %s4151_s26 = smov 32  }
  0x2e   : > { %v3690_v60 = vld [vmem:[%s695_s23] ss:$0 sm:$0xff]  ;;  %s4184_s24 = smov %s4183_s29 }
  0x30   : > { %825 = vmatpush1.bf16.msra.mxu0 %v3253_v22 }
  0x31   : > { %3051 = vmatprep.subr.bf16.mxu0 %v3437_v42 }
  0xb0   : > { %v705_v4 = vpop.xlane.xlu0 %704 }
  0xb1   : > { %v710_v5 = vmul.f32 0.015625, %v705_v4 }
  0xb3   : > { %v712_v6 = vsub.f32 %v698_v0, %v710_v5 }
  0xb4   : > { %v708_v7 = vpop.xlane.xlu0 %707 }
  0xb5   : > { %v711_v8 = vmul.f32 0.015625, %v708_v7  ;;  %v714_v9 = vmul.f32 %v712_v6, %v712_v6 }
  0xb7   : > { %v713_v10 = vsub.f32 %v699_v1, %v711_v8  ;;  %v716_v11 = vsel %vm702_vm0, %v714_v9, 0.0 }
  0xb8   : > { %717 = vadd.xlane.f32.xlu1 %v716_v11 }
  0xb9   : > { %v715_v12 = vmul.f32 %v713_v10, %v713_v10 }
  0xbb   : > { %v719_v13 = vsel %vm702_vm0, %v715_v12, 0.0 }
  0xbc   : > { %720 = vadd.xlane.f32.xlu1 %v719_v13 }
 0x141   : > { %v718_v23 = vpop.xlane.xlu1 %717 }
 0x142   : > { %v722_v24 = vmul.f32 0.015625, %v718_v23 }
 0x144   : > { %v724_v25 = vadd.f32 1e-12, %v722_v24 }
 0x145   : > { %v721_v26 = vpop.xlane.xlu1 %720 }
 0x146   : > { %3306 = vrsqrt.f32 %v724_v25  ;;  %v723_v27 = vmul.f32 0.015625, %v721_v26 }
 0x148   : > { %v725_v28 = vadd.f32 1e-12, %v723_v27 }
 0x14a   : > { %3308 = vrsqrt.f32 %v725_v28 }
 0x153   : > { %v3307_v29 = vpop.eup %3306 }
 0x154   : > { %v728_v30 = vmul.f32 %v3307_v29, %v712_v6 }
 0x156   : > { %v736_v34 = vmul.f32 %v2805_v31, %v728_v30 }
 0x157   : > { %v3309_v32 = vpop.eup %3308 }
 0x158   : > { %v729_v33 = vmul.f32 %v3309_v32, %v713_v10  ;;  %v3651_v37 = vadd.f32 %v2806_v35, %v736_v34 }
 0x15a   : > { %v737_v36 = vmul.f32 %v2805_v31, %v729_v33 }
 0x15c   : > { %v3653_v38 = vadd.f32 %v2806_v35, %v737_v36 }
 0x15e   : > { %v746_v39 = vpack.c.bf16 %v3653_v38, %v3651_v37 }
 0x160   : > { %2815 = vmatmul.mubr.msk.bf16.vlgmr.msra.gmra.mxu0 %vm702_vm0, %v746_v39 }
 0x161   : > { %3055 = vmatprep.mubr.msk.bf16.mxu0 %vm3438_vm1, %v3437_v42 }
 0x220   : > { %v844_v45 = vpop.f32.mrf.mxu0 }
 0x221   : > { %v845_v49 = vadd.f32 %v844_v45, %v760_v46 }
 0x222   : > { %v846_v47 = vpop.f32.mrf.mxu0 }
 0x223   : > { %v847_v58 = vadd.f32 %v846_v47, %v764_v56 }
 0x224   : > { %v848_v48 = vpop.f32.mrf.mxu0 }
 0x225   : > { %v849_v50 = vadd.f32 %v848_v48, %v760_v46 }
 0x226   : > { %v850_v54 = vpop.f32.mrf.mxu0 }
 0x227   : > { %v853_v51 = vpack.c.bf16 %v849_v50, %v845_v49  ;;  %v851_v57 = vadd.f32 %v850_v54, %v764_v56 }
 0x229   : > { %856 = vrot.lane.b32.xlu0 %v853_v51, %s4152_s27  ;;  %v3679_v59 = vpack.c.bf16 %v851_v57, %v847_v58 }
 0x22d   : > { %993 = vrot.lane.b32.xlu0 %v853_v51, %s4153_s1 }
 0x29b   : > { %v857_v53 = vpop.permute.xlu0 %856 }
 0x29c   : > { %v863_v55 = vsel %vm858_vm2, %v857_v53, 0 }
 0x29d   : > { %3028 = vmatpush3.bf16.xpose.msra.mxu1 %v863_v55 }
 0x29e   : > { %3033 = vmatprep.subr.bf16.mxu1 %v3437_v42 }
 0x29f   : > { %v994_v27 = vpop.permute.xlu0 %993 }
 0x2a4   : > { %3030 = vmatmul.mubr.msk.bf16.vlgmr.msra.gmra.mxu1 %vm858_vm2, %v853_v51 }
 0x2a5   : > { %3034 = vmatpush3.bf16.msra.mxu1 %v3679_v59  ;;  %3035 = vmatprep.mubr.msk.bf16.mxu1 %vm3438_vm1, %v3437_v42 }
 0x2a6   : > { %3039 = vmatprep.subr.bf16.mxu1 %v3437_v42 }
 0x364   : > { %v899_v61 = vpop.f32.mrf.mxu1 }
 0x365   : > { %v906_v62 = vmul.f32 0.17677669, %v899_v61 }
 0x366   : > { %v3031_v63 = vpop.f32.mrf.mxu1 }
 0x367   : > { %v914_v0 = vadd.f32 %v3690_v60, %v906_v62 }
 0x368   : > { %v902_v1 = vpop.f32.mrf.mxu1 }
 0x369   : > { %v907_v2 = vmul.f32 0.17677669, %v902_v1  ;;  %v917_v3 = vsel %vm916_vm3, %v914_v0, -inf }
 0x36a   : > { %918 = vmax.xlane.f32.xlu1 %v917_v3  ;;  %v3032_v4 = vpop.f32.mrf.mxu1 }
 0x36b   : > { %v915_v5 = vadd.f32 %v3690_v60, %v907_v2  ;;  %v3254_v4 = vld [vmem:[%s4183_s29 + $0x8] sm:$0xff]  }
 0x36d   : > { %v920_v6 = vsel %vm916_vm3, %v915_v5, -inf }
 0x36e   : > { %921 = vmax.xlane.f32.xlu1 %v920_v6  ;;  %v3256_v6 = vld [vmem:[%s4184_s24 + $0x18] sm:$0xff]  }
 0x36f   : > { %3052 = vmatpush3.bf16.msra.mxu0 %v3256_v6  ;;  %v3266_v6 = vld [vmem:[%s4133_s12 + $0x18] sm:$0xff]  }
 0x370   : > { %3053 = vmatprep.subr.bf16.mxu0 %v3437_v42 }
 0x3f3   : > { %v919_v7 = vpop.xlane.xlu1 %918 }
 0x3f4   : > { %v923_v8 = vsub.f32 %v914_v0, %v919_v7  ;;  %v3257_v7 = vld [vmem:[%s4184_s24 + $0x10] sm:$0xff]  }
 0x3f5   : > { %3054 = vmatpush3.bf16.msra.mxu0 %v3257_v7  ;;  %v3267_v7 = vld [vmem:[%s4133_s12 + $0x10] sm:$0xff]  }
 0x3f6   : > { %v925_v9 = vmul.f32 1.442695, %v923_v8  ;;  %3067 = vmatprep.subr.bf16.mxu0 %v3437_v42 }
 0x3f7   : > { %v922_v10 = vpop.xlane.xlu1 %921 }
 0x3f8   : > { %3310 = vpow2.f32 %v925_v9  ;;  %v924_v11 = vsub.f32 %v915_v5, %v922_v10 }
 0x3fa   : > { %v927_v12 = vmul.f32 1.442695, %v924_v11 }
 0x3fc   : > { %3312 = vpow2.f32 %v927_v12 }
 0x405   : > { %v3311_v13 = vpop.eup %3310 }
 0x406   : > { %v929_v14 = vsel %vm916_vm3, %v3311_v13, 0.0 }
 0x407   : > { %930 = vadd.xlane.f32.xlu1 %v929_v14 }
 0x409   : > { %v3313_v15 = vpop.eup %3312 }
 0x40a   : > { %v932_v16 = vsel %vm916_vm3, %v3313_v15, 0.0 }
 0x40b   : > { %933 = vadd.xlane.f32.xlu1 %v932_v16 }
 0x41c   : > { %995 = vrot.lane.b32.xlu1 %v853_v51, %s4151_s26  ;;  %s4188_s26 = smov 32  }
 0x490   : > { %v931_v17 = vpop.xlane.xlu1 %930 }
 0x491   : > { %3314 = vrcp.f32 %v931_v17 }
 0x494   : > { %v934_v19 = vpop.xlane.xlu1 %933 }
 0x495   : > { %3316 = vrcp.f32 %v934_v19  ;;  %v2827_v19 = vld [vmem:[%s4185_s7] ss:$0 sm:$0xff] }
 0x498   : > { %v996_v24 = vpop.permute.xlu1 %995 }
 0x499   : > { %v1001_v26 = vsel %vm858_vm2, %v996_v24, 0 }
 0x49e   : > { %v3315_v20 = vpop.eup %3314 }
 0x49f   : > { %v937_v22 = vmul.f32 %v3315_v20, %v3311_v13 }
 0x4a2   : > { %v3317_v21 = vpop.eup %3316 }
 0x4a3   : > { %v938_v23 = vmul.f32 %v3317_v21, %v3313_v15 }
 0x4a5   : > { %v939_v25 = vpack.c.bf16 %v938_v23, %v937_v22 }
 0x4a7   : > { %3036 = vmatmul.mubr.msk.bf16.vlgmr.msra.gmra.mxu1 %vm916_vm3, %v939_v25 }
 0x4a8   : > { %3040 = vmatpush3.bf16.xpose.msra.mxu1 %v1001_v26  ;;  %3041 = vmatprep.mubr.msk.bf16.mxu1 %vm3438_vm1, %v3437_v42 }
 0x4a9   : > { %3045 = vmatprep.subr.bf16.mxu1 %v3437_v42 }
 0x4af   : > { %3042 = vmatmul.mubr.msk.bf16.vlgmr.msra.gmra.mxu1 %vm858_vm2, %v994_v27 }
 0x4b0   : > { %3047 = vmatprep.mubr.msk.bf16.mxu1 %vm3438_vm1, %v3437_v42 }
 0x567   : > { %v977_v28 = vpop.f32.mrf.mxu1 }
 0x569   : > { %v3037_v29 = vpop.f32.mrf.mxu1 }
 0x56b   : > { %v980_v30 = vpop.f32.mrf.mxu1 }
 0x56c   : > { %v984_v31 = vpack.c.bf16 %v980_v30, %v977_v28 }
 0x56d   : > { %v3038_v32 = vpop.f32.mrf.mxu1 }
 0x56f   : > { %v1037_v33 = vpop.f32.mrf.mxu1 }
 0x570   : > { %v1044_v34 = vmul.f32 0.17677669, %v1037_v33 }
 0x571   : > { %v3043_v35 = vpop.f32.mrf.mxu1 }
 0x572   : > { %v1046_v36 = vadd.f32 %v3690_v60, %v1044_v34 }
 0x573   : > { %v1040_v39 = vpop.f32.mrf.mxu1 }
 0x574   : > { %v1045_v40 = vmul.f32 0.17677669, %v1040_v39  ;;  %v1048_v44 = vsel %vm916_vm3, %v1046_v36, -inf }
 0x575   : > { %1049 = vmax.xlane.f32.xlu0 %v1048_v44  ;;  %v3044_v45 = vpop.f32.mrf.mxu1 }
 0x576   : > { %v1047_v46 = vadd.f32 %v3690_v60, %v1045_v40  ;;  %v3259_v45 = vld [vmem:[%s4131_s10 + $0x10] sm:$0xff]  }
 0x578   : > { %v1051_v47 = vsel %vm916_vm3, %v1047_v46, -inf }
 0x579   : > { %1052 = vmax.xlane.f32.xlu1 %v1051_v47  ;;  %v3261_v47 = vld [vmem:[%s4131_s10] sm:$0xff]  }
 0x5fe   : > { %v1050_v48 = vpop.xlane.xlu0 %1049 }
 0x5ff   : > { %v1054_v49 = vsub.f32 %v1046_v36, %v1050_v48 }
 0x601   : > { %v1056_v50 = vmul.f32 1.442695, %v1054_v49 }
 0x602   : > { %v1053_v51 = vpop.xlane.xlu1 %1052 }
 0x603   : > { %3318 = vpow2.f32 %v1056_v50  ;;  %v1055_v53 = vsub.f32 %v1047_v46, %v1053_v51  ;;  %v3260_v46 = vld [vmem:[%s4131_s10 + $0x8] sm:$0xff]  }
 0x605   : > { %v1058_v54 = vmul.f32 1.442695, %v1055_v53 }
 0x607   : > { %3320 = vpow2.f32 %v1058_v54 }
 0x610   : > { %v3319_v55 = vpop.eup %3318 }
 0x611   : > { %v1060_v56 = vsel %vm916_vm3, %v3319_v55, 0.0 }
 0x612   : > { %1061 = vadd.xlane.f32.xlu0 %v1060_v56 }
 0x614   : > { %v3321_v57 = vpop.eup %3320 }
 0x615   : > { %v1063_v58 = vsel %vm916_vm3, %v3321_v57, 0.0 }
 0x616   : > { %1064 = vadd.xlane.f32.xlu0 %v1063_v58 }
 0x62c   : > { %1072 = vrot.lane.b32.xlu0 %v3679_v59, %s4153_s1  ;;  %v3255_v59 = vld [vmem:[%s4184_s24] sm:$0xff]   ;;  %s4187_s1 = smov 64  }
 0x69b   : > { %v1062_v61 = vpop.xlane.xlu0 %1061 }
 0x69c   : > { %3322 = vrcp.f32 %v1062_v61 }
 0x69f   : > { %v1065_v62 = vpop.xlane.xlu0 %1064 }
 0x6a0   : > { %3324 = vrcp.f32 %v1065_v62 }
 0x6a3   : > { %v1073_v63 = vpop.permute.xlu0 %1072 }
 0x6a4   : > { %3046 = vmatpush3.bf16.msra.mxu1 %v1073_v63  ;;  %v2829_v63 = vld [vmem:[%s4130_s9] ss:$0 sm:$0xff] }
 0x6a5   : > { %3059 = vmatprep.subr.bf16.mxu1 %v3437_v42 }
 0x6a9   : > { %v3323_v0 = vpop.eup %3322 }
 0x6aa   : > { %v1068_v2 = vmul.f32 %v3323_v0, %v3319_v55 }
 0x6ad   : > { %v3325_v1 = vpop.eup %3324 }
 0x6ae   : > { %v1069_v3 = vmul.f32 %v3325_v1, %v3321_v57  ;;  %v2828_v57 = vld [vmem:[%s4129_s8] ss:$0 sm:$0xff] }
 0x6b0   : > { %v1070_v5 = vpack.c.bf16 %v1069_v3, %v1068_v2 }
 0x6b2   : > { %3048 = vmatmul.mubr.msk.bf16.vlgmr.msra.gmra.mxu1 %vm916_vm3, %v1070_v5  ;;  %v3263_v5 = vld [vmem:[%s4133_s12 + $0x30] sm:$0xff]  }
 0x6b3   : > { %3060 = vmatpush3.bf16.msra.mxu1 %v3254_v4  ;;  %3063 = vmatprep.mubr.msk.bf16.mxu1 %vm3438_vm1, %v3437_v42  ;;  %v3262_v4 = vld [vmem:[%s4133_s12 + $0x38] sm:$0xff]  }
 0x6b4   : > { %3061 = vmatprep.subr.bf16.mxu1 %v3437_v42 }
 0x6b7   : > { %3062 = vmatpush3.bf16.msra.mxu1 %v3255_v59  ;;  %v3264_v59 = vld [vmem:[%s4133_s12 + $0x28] sm:$0xff]  }
 0x6b8   : > { %3079 = vmatprep.subr.bf16.mxu1 %v3437_v42 }
 0x6ba   : > { %3064 = vmatmul.mubr.msk.bf16.vlgmr.msra.gmra.mxu1 %vm858_vm2, %v984_v31 }
 0x6bb   : > { %3095 = vmatprep.mubr.msk.bf16.mxu1 %vm3438_vm1, %v3437_v42  ;;  %3080 = vmatpush3.bf16.msra.mxu1 %v3262_v4 }
 0x6bc   : > { %3081 = vmatprep.subr.bf16.mxu1 %v3437_v42 }
 0x6bf   : > { %3082 = vmatpush3.bf16.msra.mxu1 %v3263_v5 }
 0x6c0   : > { %3083 = vmatprep.subr.bf16.mxu1 %v3437_v42 }
 0x6c3   : > { %3084 = vmatpush3.bf16.msra.mxu1 %v3264_v59 }
 0x6c4   : > { %3085 = vmatprep.subr.bf16.mxu1 %v3437_v42 }
 0x772   : > { %v1112_v8 = vpop.f32.mrf.mxu1 }
 0x774   : > { %v3049_v9 = vpop.f32.mrf.mxu1 }
 0x775   : > { %v3269_v9 = vld [vmem:[%s4133_s12] sm:$0xff]  }
 0x776   : > { %v1115_v10 = vpop.f32.mrf.mxu1 }
 0x777   : > { %v1119_v11 = vpack.c.bf16 %v1115_v10, %v1112_v8  ;;  %v3268_v8 = vld [vmem:[%s4133_s12 + $0x8] sm:$0xff]   ;;  %v2830_v10 = vld [vmem:[%s4132_s11] ss:$0 sm:$0xff] }
 0x778   : > { %v3050_v12 = vpop.f32.mrf.mxu1 }
 0x779   : > { %3056 = vmatmul.mubr.msk.bf16.vlgmr.msra.gmra.mxu0 %vm858_vm2, %v1119_v11 }
 0x77a   : > { %v1225_v13 = vpop.f32.mrf.mxu1  ;;  %3075 = vmatprep.mubr.msk.bf16.mxu0 %vm3438_vm1, %v3437_v42 }
 0x77c   : > { %v3065_v14 = vpop.f32.mrf.mxu1 }
 0x77e   : > { %v1228_v15 = vpop.f32.mrf.mxu1 }
 0x780   : > { %v3066_v16 = vpop.f32.mrf.mxu1 }
 0x839   : > { %v1169_v17 = vpop.f32.mrf.mxu0 }
 0x83a   : > { %v1226_v20 = vadd.f32 %v1225_v13, %v1169_v17 }
 0x83b   : > { %v3057_v21 = vpop.f32.mrf.mxu0 }
 0x83c   : > { %v1239_v22 = vadd.f32 %v2827_v19, %v1226_v20 }
 0x83d   : > { %v1172_v23 = vpop.f32.mrf.mxu0 }
 0x83e   : > { %v1229_v24 = vadd.f32 %v1228_v15, %v1172_v23  ;;  %v1241_v25 = vadd.f32 %v1239_v22, %v3651_v37 }
 0x83f   : > { %v3058_v26 = vpop.f32.mrf.mxu0 }
 0x840   : > { %v1240_v27 = vadd.f32 %v2827_v19, %v1229_v24  ;;  %v1245_v28 = vsel %vm702_vm0, %v1241_v25, 0.0 }
 0x841   : > { %1246 = vadd.xlane.f32.xlu1 %v1245_v28 }
 0x842   : > { %v1242_v29 = vadd.f32 %v1240_v27, %v3653_v38  ;;  %v3258_v38 = vld [vmem:[%s4131_s10 + $0x18] sm:$0xff]  }
 0x843   : > { %3068 = vmatpush3.bf16.msra.mxu0 %v3258_v38 }
 0x844   : > { %v1248_v30 = vsel %vm702_vm0, %v1242_v29, 0.0  ;;  %3069 = vmatprep.subr.bf16.mxu0 %v3437_v42 }
 0x845   : > { %1249 = vadd.xlane.f32.xlu1 %v1248_v30 }
 0x847   : > { %3070 = vmatpush3.bf16.msra.mxu0 %v3259_v45 }
 0x848   : > { %3071 = vmatprep.subr.bf16.mxu0 %v3437_v42 }
 0x84b   : > { %3072 = vmatpush3.bf16.msra.mxu0 %v3260_v46 }
 0x84c   : > { %3073 = vmatprep.subr.bf16.mxu0 %v3437_v42 }
 0x84f   : > { %3074 = vmatpush3.bf16.msra.mxu0 %v3261_v47 }
 0x8ca   : > { %v1247_v31 = vpop.xlane.xlu1 %1246 }
 0x8cb   : > { %v1251_v32 = vmul.f32 0.015625, %v1247_v31 }
 0x8cd   : > { %v1253_v33 = vsub.f32 %v1241_v25, %v1251_v32 }
 0x8ce   : > { %v1250_v34 = vpop.xlane.xlu1 %1249 }
 0x8cf   : > { %v1252_v35 = vmul.f32 0.015625, %v1250_v34  ;;  %v1255_v36 = vmul.f32 %v1253_v33, %v1253_v33 }
 0x8d1   : > { %v1254_v39 = vsub.f32 %v1242_v29, %v1252_v35  ;;  %v1257_v40 = vsel %vm702_vm0, %v1255_v36, 0.0 }
 0x8d2   : > { %1258 = vadd.xlane.f32.xlu1 %v1257_v40 }
 0x8d3   : > { %v1256_v37 = vmul.f32 %v1254_v39, %v1254_v39 }
 0x8d5   : > { %v1260_v44 = vsel %vm702_vm0, %v1256_v37, 0.0 }
 0x8d6   : > { %1261 = vadd.xlane.f32.xlu1 %v1260_v44 }
 0x95b   : > { %v1259_v48 = vpop.xlane.xlu1 %1258 }
 0x95c   : > { %v1263_v49 = vmul.f32 0.015625, %v1259_v48 }
 0x95e   : > { %v1265_v50 = vadd.f32 1e-12, %v1263_v49 }
 0x95f   : > { %v1262_v51 = vpop.xlane.xlu1 %1261 }
 0x960   : > { %3326 = vrsqrt.f32 %v1265_v50  ;;  %v1264_v53 = vmul.f32 0.015625, %v1262_v51 }
 0x962   : > { %v1266_v54 = vadd.f32 1e-12, %v1264_v53 }
 0x964   : > { %3328 = vrsqrt.f32 %v1266_v54 }
 0x96d   : > { %v3327_v55 = vpop.eup %3326 }
 0x96e   : > { %v1269_v56 = vmul.f32 %v3327_v55, %v1253_v33 }
 0x970   : > { %v1277_v62 = vmul.f32 %v2828_v57, %v1269_v56 }
 0x971   : > { %v3329_v58 = vpop.eup %3328 }
 0x972   : > { %v1270_v61 = vmul.f32 %v3329_v58, %v1254_v39  ;;  %v3771_v1 = vadd.f32 %v2829_v63, %v1277_v62 }
 0x974   : > { %v1278_v0 = vmul.f32 %v2828_v57, %v1270_v61 }
 0x976   : > { %v3773_v2 = vadd.f32 %v2829_v63, %v1278_v0 }
 0x978   : > { %v1287_v3 = vpack.c.bf16 %v3773_v2, %v3771_v1 }
 0x97a   : > { %3076 = vmatmul.mubr.msk.bf16.vlgmr.msra.gmra.mxu0 %vm702_vm0, %v1287_v3 }
 0x97b   : > { %1689 = vmatprep.mubr.bf16.mxu0 %v3436_v18  ;;  %v3265_v18 = vld [vmem:[%s4133_s12 + $0x20] sm:$0xff]  }
 0x97c   : > { %3086 = vmatpush3.bf16.msra.mxu1 %v3265_v18 }
 0x97d   : > { %3087 = vmatprep.subr.bf16.mxu1 %v3437_v42 }
 0x980   : > { %3088 = vmatpush3.bf16.msra.mxu1 %v3266_v6 }
 0x981   : > { %3089 = vmatprep.subr.bf16.mxu1 %v3437_v42 }
 0x984   : > { %3090 = vmatpush3.bf16.msra.mxu1 %v3267_v7 }
 0x985   : > { %3091 = vmatprep.subr.bf16.mxu1 %v3437_v42 }
 0x988   : > { %3092 = vmatpush3.bf16.msra.mxu1 %v3268_v8 }
 0x989   : > { %3093 = vmatprep.subr.bf16.mxu1 %v3437_v42 }
 0x98c   : > { %3094 = vmatpush3.bf16.msra.mxu1 %v3269_v9 }
 0x98d   : > { %3105 = vmatprep.subr.bf16.mxu1 %v3437_v42 }
 0xa3a   : > { %v1364_v11 = vpop.f32.mrf.mxu0 }
 0xa3b   : > { %v1365_v12 = vadd.f32 %v2830_v10, %v1364_v11 }
 0xa3c   : > { %v3077_v13 = vpop.f32.mrf.mxu0 }
 0xa3d   : > { %v1374_v14 = vmul.f32 0.70710677, %v1365_v12 }
 0xa3e   : > { %v1367_v15 = vpop.f32.mrf.mxu0 }
 0xa3f   : > { %v2836_v16 = vclamps-f32 %v1374_v14, 4.0  ;;  %v1368_v17 = vadd.f32 %v2830_v10, %v1367_v15  ;;  %v1371_v14 = vmul.f32 0.5, %v1365_v12 }
 0xa40   : > { %v3078_v19 = vpop.f32.mrf.mxu0 }
 0xa41   : > { %v1380_v20 = vmul.f32 %v2836_v16, %v2836_v16  ;;  %v1375_v21 = vmul.f32 0.70710677, %v1368_v17  ;;  %v1372_v15 = vmul.f32 0.5, %v1368_v17 }
 0xa43   : > { %v1382_v22 = vmul.f32 -2.7261424e-10, %v1380_v20  ;;  %v1406_v23 = vmul.f32 -1.45660715e-05, %v1380_v20  ;;  %v2837_v24 = vclamps-f32 %v1375_v21, 4.0 }
 0xa45   : > { %v1384_v25 = vadd.f32 2.7706815e-08, %v1382_v22  ;;  %v1408_v26 = vadd.f32 -0.00021337405, %v1406_v23  ;;  %v1381_v27 = vmul.f32 %v2837_v24, %v2837_v24 }
 0xa47   : > { %v1386_v28 = vmul.f32 %v1384_v25, %v1380_v20  ;;  %v1410_v29 = vmul.f32 %v1408_v26, %v1380_v20  ;;  %v1383_v30 = vmul.f32 -2.7261424e-10, %v1381_v27  ;;  %v1407_v31 = vmul.f32 -1.45660715e-05, %v1381_v27 }
 0xa49   : > { %v1388_v32 = vadd.f32 -2.101024e-06, %v1386_v28  ;;  %v1412_v33 = vadd.f32 -0.001682827, %v1410_v29  ;;  %v1385_v34 = vadd.f32 2.7706815e-08, %v1383_v30 }
 0xa4a   : > { %v1409_v35 = vadd.f32 -0.00021337405, %v1407_v31 }
 0xa4b   : > { %v1390_v36 = vmul.f32 %v1388_v32, %v1380_v20  ;;  %v1414_v39 = vmul.f32 %v1412_v33, %v1380_v20  ;;  %v1387_v40 = vmul.f32 %v1385_v34, %v1381_v27 }
 0xa4c   : > { %v1411_v37 = vmul.f32 %v1409_v35, %v1381_v27 }
 0xa4d   : > { %v1392_v44 = vadd.f32 -5.6925062e-05, %v1390_v36  ;;  %v1416_v38 = vadd.f32 -0.0073733293, %v1414_v39  ;;  %v1389_v45 = vadd.f32 -2.101024e-06, %v1387_v40 }
 0xa4e   : > { %v1413_v46 = vadd.f32 -0.001682827, %v1411_v37 }
 0xa4f   : > { %v1394_v47 = vmul.f32 %v1392_v44, %v1380_v20  ;;  %v1418_v48 = vmul.f32 %v1416_v38, %v1380_v20  ;;  %v1391_v49 = vmul.f32 %v1389_v45, %v1381_v27  ;;  %v3270_v44 = vld [vmem:[%s4178_s0 + $0x70] ss:$8 sps:$4 sm:$0xff]   ;;  %v3275_v38 = vld [vmem:[%s4178_s0 + $0x64] ss:$8 sps:$4 sm:$0xff]   ;;  %v3273_v45 = vld [vmem:[%s4178_s0 + $0x60] ss:$8 sps:$4 sm:$0xff]  }
 0xa50   : > { %v1415_v50 = vmul.f32 %v1413_v46, %v1381_v27  ;;  %v3278_v46 = vld [vmem:[%s4178_s0 + $0x54] ss:$8 sps:$4 sm:$0xff]  }
 0xa51   : > { %v1396_v51 = vadd.f32 -0.00073499064, %v1394_v47  ;;  %v1420_v53 = vadd.f32 -0.014264739, %v1418_v48  ;;  %v1393_v54 = vadd.f32 -5.6925062e-05, %v1391_v49 }
 0xa52   : > { %v1417_v55 = vadd.f32 -0.0073733293, %v1415_v50  ;;  %v3276_v47 = vld [vmem:[%s4178_s0 + $0x50] ss:$8 sps:$4 sm:$0xff]   ;;  %v3281_v48 = vld [vmem:[%s4178_s0 + $0x44] ss:$8 sps:$4 sm:$0xff]  }
 0xa53   : > { %v1398_v56 = vmul.f32 %v1396_v51, %v1380_v20  ;;  %3330 = vrcp.f32 %v1420_v53  ;;  %v1395_v57 = vmul.f32 %v1393_v54, %v1381_v27  ;;  %v3279_v49 = vld [vmem:[%s4178_s0 + $0x40] ss:$8 sps:$4 sm:$0xff]  }
 0xa54   : > { %v1419_v58 = vmul.f32 %v1417_v55, %v1381_v27 }
 0xa55   : > { %v1400_v61 = vadd.f32 -0.0029546, %v1398_v56  ;;  %v1397_v62 = vadd.f32 -0.00073499064, %v1395_v57 }
 0xa56   : > { %v1421_v63 = vadd.f32 -0.014264739, %v1419_v58 }
 0xa57   : > { %v1399_v0 = vmul.f32 %v1397_v62, %v1381_v27  ;;  %v1402_v3 = vmul.f32 %v1400_v61, %v1380_v20  ;;  %v2847_v61 = vld [vmem:[%s4135_s14] ss:$0 sm:$0xff] }
 0xa58   : > { %3332 = vrcp.f32 %v1421_v63 }
 0xa59   : > { %v1401_v4 = vadd.f32 -0.0029546, %v1399_v0  ;;  %v1404_v5 = vadd.f32 -0.016096033, %v1402_v3  ;;  %v2848_v3 = vld [vmem:[%s4136_s15] ss:$0 sm:$0xff] }
 0xa5b   : > { %v1403_v59 = vmul.f32 %v1401_v4, %v1381_v27  ;;  %v1422_v6 = vmul.f32 %v2836_v16, %v1404_v5  ;;  %v2838_v16 = vld [vmem:[%s4134_s13] ss:$0 sm:$0xff] }
 0xa5d   : > { %v1405_v7 = vadd.f32 -0.016096033, %v1403_v59 }
 0xa5f   : > { %v1423_v9 = vmul.f32 %v2837_v24, %v1405_v7 }
 0xa60   : > { %v3331_v18 = vpop.eup %3330 }
 0xa61   : > { %v1425_v8 = vmul.f32 %v3331_v18, %v1422_v6  ;;  %v2857_v6 = vld [vmem:[%s4181_s2 + $0x2] sm:$0x3] }
 0xa63   : > { %v1428_v11 = vadd.f32 1.0, %v1425_v8  ;;  %v1607_v8 = vrot.slane %v2857_v6, %v759_v43 }
 0xa65   : > { %v3333_v10 = vpop.eup %3332  ;;  %v1430_v21 = vmul.f32 %v1428_v11, %v1371_v14 }
 0xa66   : > { %v1427_v13 = vmul.f32 %v3333_v10, %v1423_v9  ;;  %v1611_v10 = vrot.slane %v2857_v6, %v763_v52 }
 0xa68   : > { %v1429_v19 = vadd.f32 1.0, %v1427_v13 }
 0xa6a   : > { %v1431_v22 = vmul.f32 %v1429_v19, %v1372_v15 }
 0xa6c   : > { %v1432_v23 = vpack.c.bf16 %v1431_v22, %v1430_v21 }
 0xa6e   : > { %3096 = vmatmul.mubr.bf16.vlgmr.msra.gmra.mxu1 %v1432_v23 }
 0xa6f   : > { %3107 = vmatprep.mubr.msk.bf16.mxu1 %vm3438_vm1, %v3437_v42 }
 0xb2e   : > { %v1538_v20 = vpop.f32.mrf.mxu1 }
 0xb2f   : > { %v1539_v25 = vadd.f32 %v2838_v16, %v1538_v20 }
 0xb30   : > { %v3097_v24 = vpop.f32.mrf.mxu1 }
 0xb31   : > { %v1545_v26 = vadd.f32 %v1539_v25, %v3771_v1 }
 0xb32   : > { %v1541_v27 = vpop.f32.mrf.mxu1 }
 0xb33   : > { %v1542_v12 = vadd.f32 %v2838_v16, %v1541_v27  ;;  %v1549_v17 = vsel %vm702_vm0, %v1545_v26, 0.0 }
 0xb34   : > { %1550 = vadd.xlane.f32.xlu1 %v1549_v17  ;;  %v3098_v28 = vpop.f32.mrf.mxu1 }
 0xb35   : > { %v1546_v29 = vadd.f32 %v1542_v12, %v3773_v2  ;;  %v3272_v2 = vld [vmem:[%s4178_s0 + $0x74] ss:$8 sps:$4 sm:$0xff]  }
 0xb36   : > { %1665 = vmatprep.subr.bf16.mxu0 %v3272_v2 }
 0xb37   : > { %v1552_v30 = vsel %vm702_vm0, %v1546_v29, 0.0  ;;  %1666 = vmatpush1.bf16.msra.mxu0 %v3270_v44 }
 0xb38   : > { %1553 = vadd.xlane.f32.xlu0 %v1552_v30  ;;  %1667 = vmatprep.subr.bf16.mxu0 %v3275_v38 }
 0xb3b   : > { %1668 = vmatpush1.bf16.msra.mxu0 %v3273_v45 }
 0xb3c   : > { %1669 = vmatprep.subr.bf16.mxu0 %v3278_v46 }
 0xb3f   : > { %1670 = vmatpush1.bf16.msra.mxu0 %v3276_v47 }
 0xb40   : > { %1671 = vmatprep.subr.bf16.mxu0 %v3281_v48 }
 0xb43   : > { %1672 = vmatpush1.bf16.msra.mxu0 %v3279_v49 }
 0xb44   : > { %3099 = vmatprep.subr.bf16.mxu0 %v3437_v42 }
 0xbbd   : > { %v1551_v31 = vpop.xlane.xlu1 %1550 }
 0xbbe   : > { %v1555_v32 = vmul.f32 0.015625, %v1551_v31 }
 0xbc0   : > { %v1557_v33 = vsub.f32 %v1545_v26, %v1555_v32 }
 0xbc1   : > { %v1554_v34 = vpop.xlane.xlu0 %1553 }
 0xbc2   : > { %v1556_v35 = vmul.f32 0.015625, %v1554_v34  ;;  %v1559_v36 = vmul.f32 %v1557_v33, %v1557_v33 }
 0xbc4   : > { %v1558_v39 = vsub.f32 %v1546_v29, %v1556_v35  ;;  %v1561_v1 = vsel %vm702_vm0, %v1559_v36, 0.0 }
 0xbc5   : > { %1562 = vadd.xlane.f32.xlu1 %v1561_v1 }
 0xbc6   : > { %v1560_v40 = vmul.f32 %v1558_v39, %v1558_v39 }
 0xbc8   : > { %v1564_v37 = vsel %vm702_vm0, %v1560_v40, 0.0 }
 0xbc9   : > { %1565 = vadd.xlane.f32.xlu1 %v1564_v37 }
 0xc4e   : > { %v1563_v50 = vpop.xlane.xlu1 %1562 }
 0xc4f   : > { %v1567_v51 = vmul.f32 0.015625, %v1563_v50 }
 0xc51   : > { %v1569_v53 = vadd.f32 1e-12, %v1567_v51 }
 0xc52   : > { %v1566_v54 = vpop.xlane.xlu1 %1565 }
 0xc53   : > { %3334 = vrsqrt.f32 %v1569_v53  ;;  %v1568_v55 = vmul.f32 0.015625, %v1566_v54 }
 0xc55   : > { %v1570_v56 = vadd.f32 1e-12, %v1568_v55 }
 0xc57   : > { %3336 = vrsqrt.f32 %v1570_v56 }
 0xc60   : > { %v3335_v57 = vpop.eup %3334 }
 0xc61   : > { %v1573_v58 = vmul.f32 %v3335_v57, %v1557_v33 }
 0xc63   : > { %v1581_v0 = vmul.f32 %v2847_v61, %v1573_v58 }
 0xc64   : > { %v3337_v62 = vpop.eup %3336 }
 0xc65   : > { %v1574_v63 = vmul.f32 %v3337_v62, %v1558_v39  ;;  %v3856_v5 = vadd.f32 %v2848_v3, %v1581_v0 }
 0xc67   : > { %v1582_v4 = vmul.f32 %v2847_v61, %v1574_v63 }
 0xc69   : > { %v3858_v59 = vadd.f32 %v2848_v3, %v1582_v4 }
 0xc6b   : > { %v1591_v18 = vpack.c.bf16 %v3858_v59, %v3856_v5 }
 0xc6d   : > { %2866 = vmatmul.mubr.msk.bf16.vlgmr.msra.gmra.mxu0 %vm702_vm0, %v1591_v18 }
 0xc6e   : > { %3101 = vmatprep.mubr.msk.bf16.mxu0 %vm3438_vm1, %v3437_v42 }
 0xd2d   : > { %v1691_v7 = vpop.f32.mrf.mxu0 }
 0xd2e   : > { %v1692_v13 = vadd.f32 %v1691_v7, %v1607_v8 }
 0xd2f   : > { %v1693_v9 = vpop.f32.mrf.mxu0 }
 0xd30   : > { %v1694_v19 = vadd.f32 %v1693_v9, %v1611_v10 }
 0xd31   : > { %v1695_v11 = vpop.f32.mrf.mxu0 }
 0xd32   : > { %v1696_v14 = vadd.f32 %v1695_v11, %v1607_v8 }
 0xd33   : > { %v1697_v15 = vpop.f32.mrf.mxu0 }
 0xd34   : > { %v1700_v21 = vpack.c.bf16 %v1696_v14, %v1692_v13  ;;  %v1698_v22 = vadd.f32 %v1697_v15, %v1611_v10 }
 0xd36   : > { %v3872_v23 = vpack.c.bf16 %v1698_v22, %v1694_v19  ;;  %1833 = vrot.lane.b32.xlu0 %v1700_v21, %s4186_s3  ;;  %1703 = vrot.lane.b32.xlu1 %v1700_v21, %s4187_s1  ;;  %s685_s1 = sand.u32 1, %s3426_s28  }
 0xd37   : > { %s4081_s29 = scalar_lea.sflag [#allocation3], %s685_s1 }
 0xd38   : > { %3106 = vmatpush3.bf16.msra.mxu1 %v3872_v23 }
 0xd39   : > { %3117 = vmatprep.subr.bf16.mxu1 %v3437_v42 }
 0xd3a   : > { %1835 = vrot.lane.b32.xlu1 %v1700_v21, %s4188_s26  ;;  %s2802_s26 = sshll.u32 %s685_s1, 4 }
 0xd3b   : > { %s687_s30 = scalar_lea.vmem [#allocation2], %s2802_s26 }
 0xd3c   : > { %s2727_s23 = sshll.u32 %s687_s30, 4  ;;  %s4074_s23 = int_to_ptr.vmem [resolvable:$true] %s2727_s23 }
 0xd3d   : > { %s3374_s26 = scalar_lea.vmem %s4074_s23, 256  ;;  %p3381_p0 = scmp.lt.s32.totalorder %s4074_s23, %s3379_s22 }
 0xd3e   : > { %p3375_p11 = scmp.ne.s32.totalorder %s4074_s23, %s3374_s26 }
 0xd40   : > { %p3376_p12 = pnand %p3375_p11, %p3598_p5 }
 0xd42   : > { %p3377_p13 = pneg %p3376_p12 }
 0xda8   : > { %v1704_v41 = vpop.permute.xlu1 %1703  ;;  %v1834_v20 = vpop.permute.xlu0 %1833 }
 0xda9   : > { %v1709_v43 = vsel %vm858_vm2, %v1704_v41, 0  ;;  %v3283_v41 = vld [vmem:[%s4184_s24 + $0x20] sm:$0xff]  }
 0xdaa   : > { %3100 = vmatpush3.bf16.xpose.msra.mxu0 %v1709_v43  ;;  %v3284_v43 = vld [vmem:[%s4184_s24 + $0x38] sm:$0xff]  }
 0xdab   : > { %3111 = vmatprep.subr.bf16.mxu0 %v3437_v42 }
 0xdac   : > { %v1836_v52 = vpop.permute.xlu1 %1835 }
 0xdad   : > { %v1841_v16 = vsel %vm858_vm2, %v1836_v52, 0  ;;  %v3285_v52 = vld [vmem:[%s4184_s24 + $0x30] sm:$0xff]  }
 0xdb1   : > { %3102 = vmatmul.mubr.msk.bf16.vlgmr.msra.gmra.mxu0 %vm858_vm2, %v1700_v21 }
 0xdb2   : > { %3112 = vmatpush3.bf16.xpose.msra.mxu0 %v1841_v16  ;;  %3113 = vmatprep.mubr.msk.bf16.mxu0 %vm3438_vm1, %v3437_v42 }
 0xdb3   : > { %3123 = vmatprep.subr.bf16.mxu0 %v3437_v42 }
 0xdb9   : > { %3114 = vmatmul.mubr.msk.bf16.vlgmr.msra.gmra.mxu0 %vm858_vm2, %v1834_v20 }
 0xdba   : > { %3127 = vmatprep.mubr.msk.bf16.mxu0 %vm3438_vm1, %v3437_v42  ;;  %3124 = vmatpush3.bf16.msra.mxu0 %v3284_v43  ;;  %v3293_v43 = vld [vmem:[%s4133_s12 + $0x60] sm:$0xff]  }
 0xdbb   : > { %3125 = vmatprep.subr.bf16.mxu0 %v3437_v42 }
 0xdbe   : > { %3126 = vmatpush3.bf16.msra.mxu0 %v3285_v52  ;;  %v3294_v52 = vld [vmem:[%s4133_s12 + $0x58] sm:$0xff]  }
 0xdbf   : > { %3139 = vmatprep.subr.bf16.mxu0 %v3437_v42 }
 0xe71   : > { %v1745_v25 = vpop.f32.mrf.mxu0 }
 0xe72   : > { %v1752_v24 = vmul.f32 0.17677669, %v1745_v25 }
 0xe73   : > { %v3103_v26 = vpop.f32.mrf.mxu0 }
 0xe74   : > { %v1754_v27 = vadd.f32 %v3690_v60, %v1752_v24 }
 0xe75   : > { %v1748_v12 = vpop.f32.mrf.mxu0 }
 0xe76   : > { %v1753_v17 = vmul.f32 0.17677669, %v1748_v12  ;;  %v1756_v28 = vsel %vm916_vm3, %v1754_v27, -inf }
 0xe77   : > { %1757 = vmax.xlane.f32.xlu1 %v1756_v28  ;;  %v3104_v29 = vpop.f32.mrf.mxu0 }
 0xe78   : > { %v1755_v30 = vadd.f32 %v3690_v60, %v1753_v17 }
 0xe79   : > { %v1877_v31 = vpop.f32.mrf.mxu0 }
 0xe7a   : > { %v1884_v32 = vmul.f32 0.17677669, %v1877_v31  ;;  %v1759_v33 = vsel %vm916_vm3, %v1755_v30, -inf }
 0xe7b   : > { %1760 = vmax.xlane.f32.xlu0 %v1759_v33  ;;  %v3115_v34 = vpop.f32.mrf.mxu0 }
 0xe7c   : > { %v1886_v35 = vadd.f32 %v3690_v60, %v1884_v32 }
 0xe7d   : > { %v1880_v36 = vpop.f32.mrf.mxu0 }
 0xe7e   : > { %v1885_v39 = vmul.f32 0.17677669, %v1880_v36  ;;  %v1888_v1 = vsel %vm916_vm3, %v1886_v35, -inf }
 0xe7f   : > { %1889 = vmax.xlane.f32.xlu1 %v1888_v1  ;;  %v3116_v40 = vpop.f32.mrf.mxu0 }
 0xe80   : > { %v1887_v37 = vadd.f32 %v3690_v60, %v1885_v39 }
 0xe82   : > { %v1891_v2 = vsel %vm916_vm3, %v1887_v37, -inf }
 0xe83   : > { %1892 = vmax.xlane.f32.xlu1 %v1891_v2 }
 0xf00   : > { %v1758_v44 = vpop.xlane.xlu1 %1757 }
 0xf01   : > { %v1762_v38 = vsub.f32 %v1754_v27, %v1758_v44 }
 0xf03   : > { %v1764_v45 = vmul.f32 1.442695, %v1762_v38 }
 0xf04   : > { %v1761_v46 = vpop.xlane.xlu0 %1760 }
 0xf05   : > { %3338 = vpow2.f32 %v1764_v45  ;;  %v1763_v47 = vsub.f32 %v1755_v30, %v1761_v46 }
 0xf07   : > { %v1766_v48 = vmul.f32 1.442695, %v1763_v47 }
 0xf08   : > { %v1890_v49 = vpop.xlane.xlu1 %1889 }
 0xf09   : > { %3340 = vpow2.f32 %v1766_v48  ;;  %v1894_v50 = vsub.f32 %v1886_v35, %v1890_v49  ;;  %v2886_v35 = vld [vmem:[%s4185_s7 + $0x1] ss:$0 sm:$0xff]  ;;  %s3380_s7 = scalar_lea.vmem %s3379_s22, 512 }
 0xf0a   : > { %p3382_p1 = scmp.lt.s32.totalorder %s3380_s7, %s3374_s26 }
 0xf0b   : > { %v1896_v51 = vmul.f32 1.442695, %v1894_v50 }
 0xf0c   : > { %v1893_v53 = vpop.xlane.xlu1 %1892  ;;  %p3383_p2 = por %p3382_p1, %p3381_p0 }
 0xf0d   : > { %3342 = vpow2.f32 %v1896_v51  ;;  %v1895_v54 = vsub.f32 %v1887_v37, %v1893_v53 }
 0xf0e   : > { %p3384_p3 = pnand %p3383_p2, %p3377_p13 }
 0xf0f   : > { %v1898_v55 = vmul.f32 1.442695, %v1895_v54 }
 0xf11   : > { %3344 = vpow2.f32 %v1898_v55 }
 0xf12   : > { %v3339_v60 = vpop.eup %3338 }
 0xf13   : > { %v1768_v56 = vsel %vm916_vm3, %v3339_v60, 0.0 }
 0xf14   : > { %1769 = vadd.xlane.f32.xlu1 %v1768_v56 }
 0xf16   : > { %v3341_v57 = vpop.eup %3340 }
 0xf17   : > { %v1771_v58 = vsel %vm916_vm3, %v3341_v57, 0.0 }
 0xf18   : > { %1772 = vadd.xlane.f32.xlu1 %v1771_v58  ;;  %v3288_v58 = vld [vmem:[%s4131_s10 + $0x28] sm:$0xff]  }
 0xf1a   : > { %v3343_v61 = vpop.eup %3342 }
 0xf1b   : > { %v1900_v62 = vsel %vm916_vm3, %v3343_v61, 0.0 }
 0xf1c   : > { %1901 = vadd.xlane.f32.xlu1 %v1900_v62 }
 0xf1e   : > { %v3345_v63 = vpop.eup %3344 }
 0xf1f   : > { %v1903_v0 = vsel %vm916_vm3, %v3345_v63, 0.0 }
 0xf20   : > { %1904 = vadd.xlane.f32.xlu0 %v1903_v0 }
 0xf2d   : > { %1912 = vrot.lane.b32.xlu1 %v3872_v23, %s4186_s3  ;;  %v3282_v23 = vld [vmem:[%s4184_s24 + $0x28] sm:$0xff]   ;;  %s4189_s3 = sld [smem:[#allocation19_spill]] }
 0xf33   : > { %s4190_s0 = smov %s4189_s3  ;;  %s4079_s2 = scalar_lea.hbm %s4189_s3, %s2960_s25 }
 0xf9d   : > { %v1770_v3 = vpop.xlane.xlu1 %1769 }
 0xf9e   : > { %3346 = vrcp.f32 %v1770_v3 }
 0xfa1   : > { %v1773_v4 = vpop.xlane.xlu1 %1772 }
 0xfa2   : > { %3348 = vrcp.f32 %v1773_v4 }
 0xfa5   : > { %v1902_v18 = vpop.xlane.xlu1 %1901 }
 0xfa6   : > { %3350 = vrcp.f32 %v1902_v18 }
 0xfa9   : > { %v1905_v6 = vpop.xlane.xlu0 %1904  ;;  %v1913_v13 = vpop.permute.xlu1 %1912 }
 0xfaa   : > { %3352 = vrcp.f32 %v1905_v6 }
 0xfab   : > { %v3347_v7 = vpop.eup %3346 }
 0xfac   : > { %v1776_v9 = vmul.f32 %v3347_v7, %v3339_v60 }
 0xfaf   : > { %v3349_v8 = vpop.eup %3348 }
 0xfb0   : > { %v1777_v10 = vmul.f32 %v3349_v8, %v3341_v57  ;;  %v3287_v57 = vld [vmem:[%s4131_s10 + $0x30] sm:$0xff]   ;;  %v2889_v8 = vld [vmem:[%s4129_s8 + $0x1] ss:$0 sm:$0xff] }
 0xfb2   : > { %v1778_v11 = vpack.c.bf16 %v1777_v10, %v1776_v9 }
 0xfb3   : > { %v3351_v14 = vpop.eup %3350 }
 0xfb4   : > { %3108 = vmatmul.mubr.msk.bf16.vlgmr.msra.gmra.mxu1 %vm916_vm3, %v1778_v11  ;;  %v1908_v19 = vmul.f32 %v3351_v14, %v3343_v61  ;;  %v3289_v61 = vld [vmem:[%s4131_s10 + $0x20] sm:$0xff]  }
 0xfb5   : > { %3118 = vmatpush3.bf16.msra.mxu1 %v1913_v13  ;;  %3119 = vmatprep.mubr.msk.bf16.mxu1 %vm3438_vm1, %v3437_v42  ;;  %v2890_v13 = vld [vmem:[%s4130_s9 + $0x1] ss:$0 sm:$0xff] }
 0xfb6   : > { %3131 = vmatprep.subr.bf16.mxu1 %v3437_v42 }
 0xfb7   : > { %v3353_v15 = vpop.eup %3352 }
 0xfb8   : > { %v1909_v21 = vmul.f32 %v3353_v15, %v3345_v63 }
 0xfba   : > { %v1910_v22 = vpack.c.bf16 %v1909_v21, %v1908_v19 }
 0xfbc   : > { %3120 = vmatmul.mubr.msk.bf16.vlgmr.msra.gmra.mxu1 %vm916_vm3, %v1910_v22  ;;  %v3290_v22 = vld [vmem:[%s4133_s12 + $0x78] sm:$0xff]  }
 0xfbd   : > { %3135 = vmatprep.mubr.msk.bf16.mxu1 %vm3438_vm1, %v3437_v42  ;;  %3132 = vmatpush3.bf16.msra.mxu1 %v3282_v23  ;;  %v3291_v23 = vld [vmem:[%s4133_s12 + $0x70] sm:$0xff]  }
 0xfbe   : > { %3133 = vmatprep.subr.bf16.mxu1 %v3437_v42 }
 0xfc1   : > { %3134 = vmatpush3.bf16.msra.mxu1 %v3283_v41  ;;  %v3292_v41 = vld [vmem:[%s4133_s12 + $0x68] sm:$0xff]  }
 0xfc2   : > { %3151 = vmatprep.subr.bf16.mxu1 %v3437_v42 }
0x1074   : > { %v1816_v16 = vpop.f32.mrf.mxu1 }
0x1076   : > { %v3109_v20 = vpop.f32.mrf.mxu1 }
0x1077   : > { %v3296_v20 = vld [vmem:[%s4133_s12 + $0x48] sm:$0xff]  }
0x1078   : > { %v1819_v25 = vpop.f32.mrf.mxu1 }
0x1079   : > { %v1823_v24 = vpack.c.bf16 %v1819_v25, %v1816_v16  ;;  %v3295_v16 = vld [vmem:[%s4133_s12 + $0x50] sm:$0xff]   ;;  %v3297_v25 = vld [vmem:[%s4133_s12 + $0x40] sm:$0xff]  }
0x107a   : > { %v3110_v26 = vpop.f32.mrf.mxu1 }
0x107b   : > { %3136 = vmatmul.mubr.msk.bf16.vlgmr.msra.gmra.mxu1 %vm858_vm2, %v1823_v24  ;;  %v2900_v24 = vld [vmem:[%s4132_s11 + $0x1] ss:$0 sm:$0xff] }
0x107c   : > { %v1952_v27 = vpop.f32.mrf.mxu1  ;;  %3167 = vmatprep.mubr.msk.bf16.mxu1 %vm3438_vm1, %v3437_v42  ;;  %3152 = vmatpush3.bf16.msra.mxu1 %v3290_v22 }
0x107d   : > { %3153 = vmatprep.subr.bf16.mxu1 %v3437_v42 }
0x107e   : > { %v3121_v12 = vpop.f32.mrf.mxu1 }
0x1080   : > { %v1955_v17 = vpop.f32.mrf.mxu1  ;;  %3154 = vmatpush3.bf16.msra.mxu1 %v3291_v23 }
0x1081   : > { %v1959_v28 = vpack.c.bf16 %v1955_v17, %v1952_v27  ;;  %3155 = vmatprep.subr.bf16.mxu1 %v3437_v42 }
0x1082   : > { %v3122_v29 = vpop.f32.mrf.mxu1 }
0x1083   : > { %3128 = vmatmul.mubr.msk.bf16.vlgmr.msra.gmra.mxu0 %vm858_vm2, %v1959_v28 }
0x1084   : > { %3147 = vmatprep.mubr.msk.bf16.mxu0 %vm3438_vm1, %v3437_v42  ;;  %3156 = vmatpush3.bf16.msra.mxu1 %v3292_v41 }
0x1085   : > { %3157 = vmatprep.subr.bf16.mxu1 %v3437_v42 }
0x1088   : > { %3158 = vmatpush3.bf16.msra.mxu1 %v3293_v43 }
0x1089   : > { %3159 = vmatprep.subr.bf16.mxu1 %v3437_v42 }
0x108c   : > { %3160 = vmatpush3.bf16.msra.mxu1 %v3294_v52 }
0x108d   : > { %3161 = vmatprep.subr.bf16.mxu1 %v3437_v42 }
0x1090   : > { %3162 = vmatpush3.bf16.msra.mxu1 %v3295_v16 }
0x1091   : > { %3163 = vmatprep.subr.bf16.mxu1 %v3437_v42 }
0x1094   : > { %3164 = vmatpush3.bf16.msra.mxu1 %v3296_v20 }
0x1095   : > { %3165 = vmatprep.subr.bf16.mxu1 %v3437_v42 }
0x1098   : > { %3166 = vmatpush3.bf16.msra.mxu1 %v3297_v25 }
0x113b   : > { %v2065_v30 = vpop.f32.mrf.mxu1 }
0x113d   : > { %v3137_v31 = vpop.f32.mrf.mxu1 }
0x113f   : > { %v2068_v32 = vpop.f32.mrf.mxu1 }
0x1141   : > { %v3138_v33 = vpop.f32.mrf.mxu1 }
0x1143   : > { %v2009_v34 = vpop.f32.mrf.mxu0 }
0x1144   : > { %v2066_v36 = vadd.f32 %v2065_v30, %v2009_v34 }
0x1145   : > { %v3129_v39 = vpop.f32.mrf.mxu0 }
0x1146   : > { %v2080_v1 = vadd.f32 %v2886_v35, %v2066_v36 }
0x1147   : > { %v2012_v40 = vpop.f32.mrf.mxu0 }
0x1148   : > { %v2069_v37 = vadd.f32 %v2068_v32, %v2012_v40  ;;  %v2082_v2 = vadd.f32 %v2080_v1, %v3856_v5 }
0x1149   : > { %v3130_v44 = vpop.f32.mrf.mxu0 }
0x114a   : > { %v2081_v38 = vadd.f32 %v2886_v35, %v2069_v37  ;;  %v2088_v45 = vsel %vm702_vm0, %v2082_v2, 0.0 }
0x114b   : > { %2089 = vadd.xlane.f32.xlu0 %v2088_v45 }
0x114c   : > { %v2083_v46 = vadd.f32 %v2081_v38, %v3858_v59  ;;  %v3286_v59 = vld [vmem:[%s4131_s10 + $0x38] sm:$0xff]  }
0x114d   : > { %3140 = vmatpush3.bf16.msra.mxu0 %v3286_v59 }
0x114e   : > { %v2091_v47 = vsel %vm702_vm0, %v2083_v46, 0.0  ;;  %3141 = vmatprep.subr.bf16.mxu0 %v3437_v42 }
0x114f   : > { %2092 = vadd.xlane.f32.xlu0 %v2091_v47 }
0x1151   : > { %3142 = vmatpush3.bf16.msra.mxu0 %v3287_v57 }
0x1152   : > { %3143 = vmatprep.subr.bf16.mxu0 %v3437_v42 }
0x1155   : > { %3144 = vmatpush3.bf16.msra.mxu0 %v3288_v58 }
0x1156   : > { %3145 = vmatprep.subr.bf16.mxu0 %v3437_v42 }
0x1159   : > { %3146 = vmatpush3.bf16.msra.mxu0 %v3289_v61 }
0x115a   : > { %3171 = vmatprep.subr.bf16.mxu0 %v3437_v42 }
0x11d4   : > { %v2090_v48 = vpop.xlane.xlu0 %2089 }
0x11d5   : > { %v2094_v49 = vmul.f32 0.015625, %v2090_v48 }
0x11d7   : > { %v2096_v50 = vsub.f32 %v2082_v2, %v2094_v49 }
0x11d8   : > { %v2093_v51 = vpop.xlane.xlu0 %2092 }
0x11d9   : > { %v2095_v53 = vmul.f32 0.015625, %v2093_v51  ;;  %v2098_v54 = vmul.f32 %v2096_v50, %v2096_v50 }
0x11db   : > { %v2097_v55 = vsub.f32 %v2083_v46, %v2095_v53  ;;  %v2100_v60 = vsel %vm702_vm0, %v2098_v54, 0.0 }
0x11dc   : > { %2101 = vadd.xlane.f32.xlu0 %v2100_v60 }
0x11dd   : > { %v2099_v5 = vmul.f32 %v2097_v55, %v2097_v55 }
0x11df   : > { %v2103_v56 = vsel %vm702_vm0, %v2099_v5, 0.0 }
0x11e0   : > { %2104 = vadd.xlane.f32.xlu0 %v2103_v56 }
0x1265   : > { %v2102_v62 = vpop.xlane.xlu0 %2101 }
0x1266   : > { %v2106_v63 = vmul.f32 0.015625, %v2102_v62 }
0x1268   : > { %v2108_v0 = vadd.f32 1e-12, %v2106_v63 }
0x1269   : > { %v2105_v3 = vpop.xlane.xlu0 %2104 }
0x126a   : > { %3354 = vrsqrt.f32 %v2108_v0  ;;  %v2107_v4 = vmul.f32 0.015625, %v2105_v3 }
0x126c   : > { %v2109_v18 = vadd.f32 1e-12, %v2107_v4 }
0x126e   : > { %3356 = vrsqrt.f32 %v2109_v18 }
0x1277   : > { %v3355_v6 = vpop.eup %3354 }
0x1278   : > { %v2112_v7 = vmul.f32 %v3355_v6, %v2096_v50 }
0x127a   : > { %v2120_v11 = vmul.f32 %v2889_v8, %v2112_v7 }
0x127b   : > { %v3357_v9 = vpop.eup %3356 }
0x127c   : > { %v2113_v10 = vmul.f32 %v3357_v9, %v2097_v55  ;;  %v3963_v15 = vadd.f32 %v2890_v13, %v2120_v11 }
0x127e   : > { %v2121_v14 = vmul.f32 %v2889_v8, %v2113_v10 }
0x1280   : > { %v3965_v19 = vadd.f32 %v2890_v13, %v2121_v14 }
0x1282   : > { %v2130_v21 = vpack.c.bf16 %v3965_v19, %v3963_v15 }
0x1284   : > { %3148 = vmatmul.mubr.msk.bf16.vlgmr.msra.gmra.mxu0 %vm702_vm0, %v2130_v21 }
0x1285   : > { %3179 = vmatprep.mubr.msk.bf16.mxu0 %vm3438_vm1, %v3437_v42 }
0x1344   : > { %v2209_v26 = vpop.f32.mrf.mxu0 }
0x1345   : > { %v2210_v27 = vadd.f32 %v2900_v24, %v2209_v26 }
0x1346   : > { %v3149_v12 = vpop.f32.mrf.mxu0 }
0x1347   : > { %v2218_v17 = vmul.f32 0.70710677, %v2210_v27  ;;  %v2216_v25 = vmul.f32 0.5, %v2210_v27 }
0x1348   : > { %v2212_v28 = vpop.f32.mrf.mxu0 }
0x1349   : > { %v2906_v29 = vclamps-f32 %v2218_v17, 4.0  ;;  %v2213_v30 = vadd.f32 %v2900_v24, %v2212_v28 }
0x134a   : > { %v3150_v31 = vpop.f32.mrf.mxu0 }
0x134b   : > { %v2224_v32 = vmul.f32 %v2906_v29, %v2906_v29  ;;  %v2219_v33 = vmul.f32 0.70710677, %v2213_v30  ;;  %v2217_v24 = vmul.f32 0.5, %v2213_v30  ;;  %v2925_v31 = vld [vmem:[%s4134_s13 + $0x1] ss:$0 sm:$0xff] }
0x134d   : > { %v2226_v34 = vmul.f32 -2.7261424e-10, %v2224_v32  ;;  %v2250_v35 = vmul.f32 -1.45660715e-05, %v2224_v32  ;;  %v2907_v36 = vclamps-f32 %v2219_v33, 4.0 }
0x134f   : > { %v2228_v39 = vadd.f32 2.7706815e-08, %v2226_v34  ;;  %v2252_v1 = vadd.f32 -0.00021337405, %v2250_v35  ;;  %v2225_v40 = vmul.f32 %v2907_v36, %v2907_v36 }
0x1351   : > { %v2230_v37 = vmul.f32 %v2228_v39, %v2224_v32  ;;  %v2254_v2 = vmul.f32 %v2252_v1, %v2224_v32  ;;  %v2227_v44 = vmul.f32 -2.7261424e-10, %v2225_v40  ;;  %v2251_v38 = vmul.f32 -1.45660715e-05, %v2225_v40 }
0x1353   : > { %v2232_v45 = vadd.f32 -2.101024e-06, %v2230_v37  ;;  %v2256_v46 = vadd.f32 -0.001682827, %v2254_v2  ;;  %v2229_v47 = vadd.f32 2.7706815e-08, %v2227_v44 }
0x1354   : > { %v2253_v48 = vadd.f32 -0.00021337405, %v2251_v38 }
0x1355   : > { %v2234_v49 = vmul.f32 %v2232_v45, %v2224_v32  ;;  %v2258_v50 = vmul.f32 %v2256_v46, %v2224_v32  ;;  %v2231_v51 = vmul.f32 %v2229_v47, %v2225_v40 }
0x1356   : > { %v2255_v53 = vmul.f32 %v2253_v48, %v2225_v40 }
0x1357   : > { %v2236_v54 = vadd.f32 -5.6925062e-05, %v2234_v49  ;;  %v2260_v55 = vadd.f32 -0.0073733293, %v2258_v50  ;;  %v2233_v60 = vadd.f32 -2.101024e-06, %v2231_v51 }
0x1358   : > { %v2257_v5 = vadd.f32 -0.001682827, %v2255_v53  ;;  %v3299_v49 = vld [vmem:[%s4137_s16 + $0x10] sm:$0xff]   ;;  %v3300_v50 = vld [vmem:[%s4137_s16 + $0x8] sm:$0xff]   ;;  %v3301_v51 = vld [vmem:[%s4137_s16] sm:$0xff]  }
0x1359   : > { %v2238_v56 = vmul.f32 %v2236_v54, %v2224_v32  ;;  %v2262_v59 = vmul.f32 %v2260_v55, %v2224_v32  ;;  %v2235_v57 = vmul.f32 %v2233_v60, %v2225_v40 }
0x135a   : > { %v2259_v58 = vmul.f32 %v2257_v5, %v2225_v40 }
0x135b   : > { %v2240_v61 = vadd.f32 -0.00073499064, %v2238_v56  ;;  %v2264_v62 = vadd.f32 -0.014264739, %v2262_v59  ;;  %v2237_v63 = vadd.f32 -5.6925062e-05, %v2235_v57 }
0x135c   : > { %v2261_v0 = vadd.f32 -0.0073733293, %v2259_v58  ;;  %v2936_v58 = vld [vmem:[%s4135_s14 + $0x1] ss:$0 sm:$0xff] }
0x135d   : > { %v2242_v3 = vmul.f32 %v2240_v61, %v2224_v32  ;;  %3358 = vrcp.f32 %v2264_v62  ;;  %v2239_v4 = vmul.f32 %v2237_v63, %v2225_v40 }
0x135e   : > { %v2263_v18 = vmul.f32 %v2261_v0, %v2225_v40  ;;  %v2937_v0 = vld [vmem:[%s4136_s15 + $0x1] ss:$0 sm:$0xff] }
0x135f   : > { %v2244_v6 = vadd.f32 -0.0029546, %v2242_v3  ;;  %v2241_v7 = vadd.f32 -0.00073499064, %v2239_v4 }
0x1360   : > { %v2265_v8 = vadd.f32 -0.014264739, %v2263_v18 }
0x1361   : > { %v2243_v9 = vmul.f32 %v2241_v7, %v2225_v40  ;;  %v2246_v10 = vmul.f32 %v2244_v6, %v2224_v32  ;;  %v2938_v7 = vld [vmem:[%s4138_s17] ss:$0 sm:$0xff] }
0x1362   : > { %3360 = vrcp.f32 %v2265_v8 }
0x1363   : > { %v2245_v11 = vadd.f32 -0.0029546, %v2243_v9  ;;  %v2248_v13 = vadd.f32 -0.016096033, %v2246_v10 }
0x1365   : > { %v2247_v14 = vmul.f32 %v2245_v11, %v2225_v40  ;;  %v2266_v22 = vmul.f32 %v2906_v29, %v2248_v13 }
0x1367   : > { %v2249_v23 = vadd.f32 -0.016096033, %v2247_v14 }
0x1369   : > { %v2267_v43 = vmul.f32 %v2907_v36, %v2249_v23 }
0x136a   : > { %v3359_v21 = vpop.eup %3358 }
0x136b   : > { %v2269_v41 = vmul.f32 %v3359_v21, %v2266_v22 }
0x136d   : > { %v2272_v16 = vadd.f32 1.0, %v2269_v41 }
0x136f   : > { %v3361_v52 = vpop.eup %3360  ;;  %v2274_v12 = vmul.f32 %v2272_v16, %v2216_v25 }
0x1370   : > { %v2271_v20 = vmul.f32 %v3361_v52, %v2267_v43 }
0x1372   : > { %v2273_v26 = vadd.f32 1.0, %v2271_v20 }
0x1374   : > { %v2275_v17 = vmul.f32 %v2273_v26, %v2217_v24 }
0x1376   : > { %v2276_v28 = vpack.c.bf16 %v2275_v17, %v2274_v12 }
0x1378   : > { %3168 = vmatmul.mubr.bf16.vlgmr.msra.gmra.mxu1 %v2276_v28 }
0x1438   : > { %v2384_v32 = vpop.f32.mrf.mxu1 }
0x1439   : > { %v2385_v33 = vadd.f32 %v2925_v31, %v2384_v32 }
0x143a   : > { %v3169_v29 = vpop.f32.mrf.mxu1 }
0x143b   : > { %v2391_v34 = vadd.f32 %v2385_v33, %v3963_v15 }
0x143c   : > { %v2387_v35 = vpop.f32.mrf.mxu1 }
0x143d   : > { %v2388_v36 = vadd.f32 %v2925_v31, %v2387_v35  ;;  %v2397_v39 = vsel %vm702_vm0, %v2391_v34, 0.0 }
0x143e   : > { %2398 = vadd.xlane.f32.xlu0 %v2397_v39  ;;  %v3170_v27 = vpop.f32.mrf.mxu1 }
0x143f   : > { %v2392_v30 = vadd.f32 %v2388_v36, %v3965_v19  ;;  %v3298_v19 = vld [vmem:[%s4137_s16 + $0x18] sm:$0xff]  }
0x1440   : > { %3172 = vmatpush3.bf16.msra.mxu0 %v3298_v19 }
0x1441   : > { %v2400_v1 = vsel %vm702_vm0, %v2392_v30, 0.0  ;;  %3173 = vmatprep.subr.bf16.mxu0 %v3437_v42 }
0x1442   : > { %2401 = vadd.xlane.f32.xlu1 %v2400_v1 }
0x1444   : > { %3174 = vmatpush3.bf16.msra.mxu0 %v3299_v49 }
0x1445   : > { %3175 = vmatprep.subr.bf16.mxu0 %v3437_v42 }
0x1448   : > { %3176 = vmatpush3.bf16.msra.mxu0 %v3300_v50 }
0x1449   : > { %3177 = vmatprep.subr.bf16.mxu0 %v3437_v42 }
0x144c   : > { %3178 = vmatpush3.bf16.msra.mxu0 %v3301_v51 }
0x144d   : > { %3183 = vmatprep.subr.bf16.mxu0 %v3437_v42 }
0x14c7   : > { %v2399_v40 = vpop.xlane.xlu0 %2398 }
0x14c8   : > { %v2403_v37 = vmul.f32 0.015625, %v2399_v40 }
0x14ca   : > { %v2405_v2 = vsub.f32 %v2391_v34, %v2403_v37 }
0x14cb   : > { %v2402_v44 = vpop.xlane.xlu1 %2401 }
0x14cc   : > { %v2404_v38 = vmul.f32 0.015625, %v2402_v44  ;;  %v2407_v45 = vmul.f32 %v2405_v2, %v2405_v2 }
0x14ce   : > { %v2406_v46 = vsub.f32 %v2392_v30, %v2404_v38  ;;  %v2409_v15 = vsel %vm702_vm0, %v2407_v45, 0.0 }
0x14cf   : > { %2410 = vadd.xlane.f32.xlu0 %v2409_v15 }
0x14d0   : > { %v2408_v47 = vmul.f32 %v2406_v46, %v2406_v46 }
0x14d2   : > { %v2412_v48 = vsel %vm702_vm0, %v2408_v47, 0.0 }
0x14d3   : > { %2413 = vadd.xlane.f32.xlu0 %v2412_v48 }
0x1558   : > { %v2411_v53 = vpop.xlane.xlu0 %2410 }
0x1559   : > { %v2415_v54 = vmul.f32 0.015625, %v2411_v53 }
0x155b   : > { %v2417_v55 = vadd.f32 1e-12, %v2415_v54 }
0x155c   : > { %v2414_v60 = vpop.xlane.xlu0 %2413 }
0x155d   : > { %3362 = vrsqrt.f32 %v2417_v55  ;;  %v2416_v5 = vmul.f32 0.015625, %v2414_v60 }
0x155f   : > { %v2418_v56 = vadd.f32 1e-12, %v2416_v5 }
0x1561   : > { %3364 = vrsqrt.f32 %v2418_v56 }
0x156a   : > { %v3363_v59 = vpop.eup %3362 }
0x156b   : > { %v2421_v57 = vmul.f32 %v3363_v59, %v2405_v2 }
0x156d   : > { %v2429_v63 = vmul.f32 %v2936_v58, %v2421_v57 }
0x156e   : > { %v3365_v61 = vpop.eup %3364 }
0x156f   : > { %v2422_v62 = vmul.f32 %v3365_v61, %v2406_v46  ;;  %v2437_v4 = vadd.f32 %v2937_v0, %v2429_v63 }
0x1571   : > { %v2430_v3 = vmul.f32 %v2936_v58, %v2422_v62 }
0x1573   : > { %v2438_v18 = vadd.f32 %v2937_v0, %v2430_v3 }
0x1575   : > { %v2439_v6 = vpack.c.bf16 %v2438_v18, %v2437_v4 }
0x1577   : > { %3180 = vmatmul.mubr.msk.bf16.vlgmr.msra.gmra.mxu0 %vm702_vm0, %v2439_v6 }
0x1578   : > { %3191 = vmatprep.mubr.msk.bf16.mxu0 %vm3438_vm1, %v3437_v42 }
0x1637   : > { %v2516_v8 = vpop.f32.mrf.mxu0 }
0x1638   : > { %v2517_v9 = vadd.f32 %v2938_v7, %v2516_v8 }
0x1639   : > { %v3181_v10 = vpop.f32.mrf.mxu0 }
0x163a   : > { %v2525_v11 = vmul.f32 0.70710677, %v2517_v9  ;;  %v2523_v62 = vmul.f32 0.5, %v2517_v9 }
0x163b   : > { %v2519_v13 = vpop.f32.mrf.mxu0 }
0x163c   : > { %v2944_v14 = vclamps-f32 %v2525_v11, 4.0  ;;  %v2520_v21 = vadd.f32 %v2938_v7, %v2519_v13 }
0x163d   : > { %v3182_v22 = vpop.f32.mrf.mxu0 }
0x163e   : > { %v2531_v23 = vmul.f32 %v2944_v14, %v2944_v14  ;;  %v2526_v41 = vmul.f32 0.70710677, %v2520_v21  ;;  %v2524_v7 = vmul.f32 0.5, %v2520_v21  ;;  %v3302_v21 = vld [vmem:[%s4141_s20 + $0x18] sm:$0xff]  }
0x163f   : > { %3184 = vmatpush3.bf16.msra.mxu0 %v3302_v21 }
0x1640   : > { %v2533_v43 = vmul.f32 -2.7261424e-10, %v2531_v23  ;;  %v2945_v52 = vclamps-f32 %v2526_v41, 4.0  ;;  %v2557_v16 = vmul.f32 -1.45660715e-05, %v2531_v23  ;;  %3185 = vmatprep.subr.bf16.mxu0 %v3437_v42 }
0x1642   : > { %v2535_v20 = vadd.f32 2.7706815e-08, %v2533_v43  ;;  %v2532_v25 = vmul.f32 %v2945_v52, %v2945_v52  ;;  %v2559_v24 = vadd.f32 -0.00021337405, %v2557_v16 }
0x1644   : > { %v2537_v26 = vmul.f32 %v2535_v20, %v2531_v23  ;;  %v2534_v12 = vmul.f32 -2.7261424e-10, %v2532_v25  ;;  %v2561_v17 = vmul.f32 %v2559_v24, %v2531_v23  ;;  %v2558_v28 = vmul.f32 -1.45660715e-05, %v2532_v25  ;;  %v3304_v24 = vld [vmem:[%s4141_s20 + $0x8] sm:$0xff]  }
0x1646   : > { %v2539_v31 = vadd.f32 -2.101024e-06, %v2537_v26  ;;  %v2536_v32 = vadd.f32 2.7706815e-08, %v2534_v12  ;;  %v2563_v33 = vadd.f32 -0.001682827, %v2561_v17 }
0x1647   : > { %v2560_v29 = vadd.f32 -0.00021337405, %v2558_v28  ;;  %v3305_v26 = vld [vmem:[%s4141_s20] sm:$0xff]  }
0x1648   : > { %v2541_v34 = vmul.f32 %v2539_v31, %v2531_v23  ;;  %v2538_v35 = vmul.f32 %v2536_v32, %v2532_v25  ;;  %v2565_v36 = vmul.f32 %v2563_v33, %v2531_v23 }
0x1649   : > { %v2562_v39 = vmul.f32 %v2560_v29, %v2532_v25 }
0x164a   : > { %v2543_v27 = vadd.f32 -5.6925062e-05, %v2541_v34  ;;  %v2540_v30 = vadd.f32 -2.101024e-06, %v2538_v35  ;;  %v2567_v1 = vadd.f32 -0.0073733293, %v2565_v36 }
0x164b   : > { %v2564_v40 = vadd.f32 -0.001682827, %v2562_v39  ;;  %v2946_v35 = vld [vmem:[%s4139_s18] ss:$0 sm:$0xff] }
0x164c   : > { %v2545_v37 = vmul.f32 %v2543_v27, %v2531_v23  ;;  %v2542_v2 = vmul.f32 %v2540_v30, %v2532_v25  ;;  %v2569_v44 = vmul.f32 %v2567_v1, %v2531_v23  ;;  %v2947_v27 = vld [vmem:[%s4140_s19] ss:$0 sm:$0xff] }
0x164d   : > { %v2566_v38 = vmul.f32 %v2564_v40, %v2532_v25 }
0x164e   : > { %v2547_v45 = vadd.f32 -0.00073499064, %v2545_v37  ;;  %v2544_v46 = vadd.f32 -5.6925062e-05, %v2542_v2  ;;  %v2571_v15 = vadd.f32 -0.014264739, %v2569_v44 }
0x164f   : > { %v2568_v47 = vadd.f32 -0.0073733293, %v2566_v38  ;;  %v2948_v2 = vld [vmem:[%s4142_s21] ss:$0 sm:$0xff] }
0x1650   : > { %v2549_v48 = vmul.f32 %v2547_v45, %v2531_v23  ;;  %v2546_v19 = vmul.f32 %v2544_v46, %v2532_v25  ;;  %3366 = vrcp.f32 %v2571_v15 }
0x1651   : > { %v2570_v49 = vmul.f32 %v2568_v47, %v2532_v25 }
0x1652   : > { %v2551_v50 = vadd.f32 -0.0029546, %v2549_v48  ;;  %v2548_v51 = vadd.f32 -0.00073499064, %v2546_v19 }
0x1653   : > { %v2572_v53 = vadd.f32 -0.014264739, %v2570_v49 }
0x1654   : > { %v2553_v54 = vmul.f32 %v2551_v50, %v2531_v23  ;;  %v2550_v55 = vmul.f32 %v2548_v51, %v2532_v25 }
0x1655   : > { %3368 = vrcp.f32 %v2572_v53 }
0x1656   : > { %v2552_v60 = vadd.f32 -0.0029546, %v2550_v55  ;;  %v2555_v5 = vadd.f32 -0.016096033, %v2553_v54 }
0x1658   : > { %v2554_v56 = vmul.f32 %v2552_v60, %v2532_v25  ;;  %v2573_v59 = vmul.f32 %v2944_v14, %v2555_v5  ;;  %v3303_v25 = vld [vmem:[%s4141_s20 + $0x10] sm:$0xff]  }
0x1659   : > { %3186 = vmatpush3.bf16.msra.mxu0 %v3303_v25 }
0x165a   : > { %v2556_v58 = vadd.f32 -0.016096033, %v2554_v56  ;;  %3187 = vmatprep.subr.bf16.mxu0 %v3437_v42 }
0x165c   : > { %v2574_v0 = vmul.f32 %v2945_v52, %v2556_v58 }
0x165d   : > { %v3367_v57 = vpop.eup %3366  ;;  %3188 = vmatpush3.bf16.msra.mxu0 %v3304_v24 }
0x165e   : > { %v2576_v61 = vmul.f32 %v3367_v57, %v2573_v59  ;;  %3189 = vmatprep.subr.bf16.mxu0 %v3437_v42 }
0x1660   : > { %v2579_v63 = vadd.f32 1.0, %v2576_v61 }
0x1661   : > { %3190 = vmatpush3.bf16.msra.mxu0 %v3305_v26 }
0x1662   : > { %v3369_v3 = vpop.eup %3368  ;;  %v2581_v4 = vmul.f32 %v2579_v63, %v2523_v62 }
0x1663   : > { %v2578_v18 = vmul.f32 %v3369_v3, %v2574_v0 }
0x1664   : > { %v2585_v6 = vsel %vm702_vm0, %v2581_v4, 0.0 }
0x1665   : > { %2586 = vadd.xlane.f32.xlu0 %v2585_v6  ;;  %v2580_v8 = vadd.f32 1.0, %v2578_v18 }
0x1667   : > { %v2582_v10 = vmul.f32 %v2580_v8, %v2524_v7 }
0x1669   : > { %v2588_v11 = vsel %vm702_vm0, %v2582_v10, 0.0 }
0x166a   : > { %2589 = vadd.xlane.f32.xlu0 %v2588_v11 }
0x16ee   : > { %v2587_v13 = vpop.xlane.xlu0 %2586 }
0x16ef   : > { %v2591_v14 = vmul.f32 0.015625, %v2587_v13 }
0x16f1   : > { %v2593_v22 = vsub.f32 %v2581_v4, %v2591_v14 }
0x16f3   : > { %v2590_v23 = vpop.xlane.xlu0 %2589  ;;  %v2595_v41 = vmul.f32 %v2593_v22, %v2593_v22 }
0x16f4   : > { %v2592_v9 = vmul.f32 0.015625, %v2590_v23 }
0x16f5   : > { %v2597_v43 = vsel %vm702_vm0, %v2595_v41, 0.0 }
0x16f6   : > { %v2594_v52 = vsub.f32 %v2582_v10, %v2592_v9  ;;  %2598 = vadd.xlane.f32.xlu0 %v2597_v43 }
0x16f8   : > { %v2596_v16 = vmul.f32 %v2594_v52, %v2594_v52 }
0x16fa   : > { %v2600_v20 = vsel %vm702_vm0, %v2596_v16, 0.0 }
0x16fb   : > { %2601 = vadd.xlane.f32.xlu0 %v2600_v20 }
0x177f   : > { %v2599_v12 = vpop.xlane.xlu0 %2598 }
0x1780   : > { %v2603_v17 = vmul.f32 0.015625, %v2599_v12 }
0x1782   : > { %v2605_v28 = vadd.f32 1e-12, %v2603_v17 }
0x1784   : > { %3370 = vrsqrt.f32 %v2605_v28  ;;  %v2602_v31 = vpop.xlane.xlu0 %2601 }
0x1785   : > { %v2604_v32 = vmul.f32 0.015625, %v2602_v31 }
0x1787   : > { %v2606_v33 = vadd.f32 1e-12, %v2604_v32 }
0x1789   : > { %3372 = vrsqrt.f32 %v2606_v33 }
0x1791   : > { %v3371_v29 = vpop.eup %3370 }
0x1792   : > { %v2609_v34 = vmul.f32 %v3371_v29, %v2593_v22 }
0x1794   : > { %v2617_v42 = vmul.f32 %v2946_v35, %v2609_v34 }
0x1796   : > { %v3373_v36 = vpop.eup %3372  ;;  %v2625_v1 = vadd.f32 %v2947_v27, %v2617_v42 }
0x1797   : > { %v2610_v39 = vmul.f32 %v3373_v36, %v2594_v52 }
0x1799   : > { %v2618_v30 = vmul.f32 %v2946_v35, %v2610_v39 }
0x179b   : > { %v2626_v40 = vadd.f32 %v2947_v27, %v2618_v30 }
0x179d   : > { %v2627_v37 = vpack.c.bf16 %v2626_v40, %v2625_v1 }
0x179f   : > { %3192 = vmatmul.mubr.msk.bf16.vlgmr.msra.gmra.mxu0 %vm702_vm0, %v2627_v37 }
0x185f   : > { %v2704_v44 = vpop.f32.mrf.mxu0 }
0x1860   : > { %v2705_v38 = vadd.f32 %v2948_v2, %v2704_v44 }
0x1861   : > { %v3193_v45 = vpop.f32.mrf.mxu0 }
0x1862   : > { %2711 = vst [vmem:[%s687_s30] sm:$0xff] %v2705_v38 }
0x1863   : > { %v2707_v46 = vpop.f32.mrf.mxu0 }
0x1864   : > { %v2708_v15 = vadd.f32 %v2948_v2, %v2707_v46 }
0x1865   : > { %v3194_v47 = vpop.f32.mrf.mxu0 }
0x1866   : > { %2712 = vst [vmem:[%s687_s30 + $0x8] sm:$0xff] %v2708_v15 }
0x1867   : > { %3387 = shalt.err (!%p3384_p3)
}
0x1868   : > { %s3388_s1 = scalar_lea.hbm %s4079_s2, 256  ;;  %s3392_s27 = scalar_lea.hbm %s4190_s0, 512 }
0x1869   : > { %p3389_p4 = scmp.ne.s32.totalorder %s4079_s2, %s3388_s1  ;;  %p3393_p9 = scmp.lt.s32.totalorder %s4079_s2, %s4190_s0 }
0x186a   : > { %p3394_p10 = scmp.lt.s32.totalorder %s3392_s27, %s3388_s1 }
0x186b   : > { %p3390_p7 = pnand %p3389_p4, %p3598_p5 }
0x186c   : > { %p3395_p11 = por %p3394_p10, %p3393_p9 }
0x186d   : > { %p3391_p8 = pneg %p3390_p7 }
0x186f   : > { %p3396_p12 = pnand %p3395_p11, %p3391_p8 }
0x1871   : > { %3399 = shalt.err (!%p3396_p12)
}
0x1872   : > { %s3443_s7 = smov 128   ;;  %s3444_s26 = smov 8  }
0x1873   : > { %3195 = dma.vmem_to_hbm [thread:$0]  (%p3598_p5), %s4074_s23, 256, %s4079_s2, %s4081_s29, %s3443_s7, %s3443_s7, %s3444_s26  }
0x1874 PF: > { %s4191_s4 = sld [smem:[#allocation7_spill]] }
0x1875   : > { %s4192_s22 = sld [smem:[#allocation5_spill]] }
0x187a   : > { %p3201_p13 = scmp.ge.s32.totalorder %s4191_s4, 2 }
0x187b   : > { %s2742_s25 = sand.u32 1, %s4192_s22  }
0x187c   : > { %p3198_p0 = pnand %p3201_p13, %p3602_p6  ;;  %s2743_s1 = scalar_lea.sflag [#allocation3], %s2742_s25 }
0x187e   : > { %p3199_p1 = pneg %p3198_p0 }
0x1880   : > { %3417 = dma.done.wait (%p3199_p1), %s2743_s1, 256  }
0x1881   : > { %3419 = vsyncadd (%p3199_p1), %s2743_s1, 4294967040  ;;  %s4194_s30 = sld [smem:[#allocation8_spill]]  ;;  %s4197_s3 = smov %s3426_s28 }
0x1882   : > { %s4195_s27 = sld [smem:[#allocation6_spill]] }
0x1883   : > { %s4196_s29 = sld [smem:[#allocation9_spill]] }
0x1887   : > { %p32_p2 = scmp.ge.s32.totalorder %s4194_s30, 4  }
0x1888   : > { %s4198_s28 = smov %s4195_s27 }
0x1889   :  { %34 = sbr.rel (!%p32_p2) target bundleno = 13 (0xd), region = 158 }
0x188e   :  { %2748 = vsyncpa [#allocation3], 1 }
0x188f   :  { %2750 = vsyncpa [#allocation3 + $0x1], 1 }

</bundles_post_ra>
